<compile_context>
chip_gen: v7x
topology: tpu7x:2x2x1
jax: 0.10.0
libtpu: 0.0.40
codegen_flags: <defaults>
</compile_context>

<pallas_src>
import functools

import jax
import jax.numpy as jnp
from jax.experimental import pallas as pl
from jax.experimental.pallas import tpu as pltpu

EPS = 1e-6
LANE = 128


def _round_up(n, m):
    return (n + m - 1) // m * m


def _vmem_capacity_bytes():
    try:
        info = pltpu.get_tpu_info()
        cap = getattr(info, "vmem_capacity_bytes", None)
        if cap:
            return int(cap)
    except Exception:
        pass
    return 64 << 20  # conservative default (v7x per-core budget)


# --------------------------- fused kernel ---------------------------

def _fused_tcn_kernel(h_real, t_real, t_pad, dmaxp, weights_resident, needs_tmask,
                      a_ref,                      # SMEM (NB, 2): PReLU scalars
                      x_hbm,                      # ANY: (B, Tp, Cp) activation in HBM
                      ebias_ref,                  # (1, 1, Hp) speaker-emb bias (block 0)
                      w1_ref, b1_ref, gn1s_ref, gn1b_ref,
                      dww_ref, dwb_ref, gn2s_ref, gn2b_ref,
                      w2_ref, b2_ref,
                      out_ref,                    # (1, Tp, Cp) resident activation
                      hbuf,                       # VMEM (Tp + 2*dmaxp, Hp) halo buffer
                      copy_sem):                  # DMA semaphore for the x load
    b = pl.program_id(0)                          # batch element
    k = pl.program_id(1)                          # block index within the stack

    def W(ref):
        # Weights: either the full stacked array is VMEM-resident (index with
        # the dynamic block id) or one block's slice was DMA'd by the pipeline.
        return ref[k] if weights_resident else ref[0]

    @pl.when(k == 0)
    def _init():
        # Pull the activation straight from HBM into the resident output block
        # (no separate pipelined input buffer), overlapping with the halo init.
        cp = pltpu.make_async_copy(x_hbm.at[b], out_ref.at[0], copy_sem)
        cp.start()
        # Zero only the halo rows; body rows are rewritten every block.
        hp_lanes = hbuf.shape[1]
        hbuf[pl.ds(0, dmaxp), :] = jnp.zeros((dmaxp, hp_lanes), jnp.float32)
        hbuf[pl.ds(dmaxp + t_pad, dmaxp), :] = jnp.zeros((dmaxp, hp_lanes), jnp.float32)
        cp.wait()

    x = out_ref[0]                                # (Tp, Cp) f32 resident activation
    d = jnp.left_shift(1, k)                      # dilation = 2**block
    inv_n = 1.0 / float(h_real * t_real)          # GlobalNorm uses the REAL count
    a1 = a_ref[k, 0]
    a2 = a_ref[k, 1]

    if needs_tmask:
        tmask = (jax.lax.broadcasted_iota(jnp.int32, (t_pad, 1), 0)
                 < t_real).astype(jnp.float32)    # zero out padded time rows
    else:
        tmask = None

    hp = w1_ref.shape[-1]
    ones_col = jnp.ones((hp, 1), jnp.float32)

    def gn_stats(v):
        # Cross-lane part of sum and sum-of-squares on the MXU; only a small
        # (Tp,1) sublane reduce is left for the XLU.  Padded lanes/rows are 0.
        s1 = jnp.sum(jnp.dot(v, ones_col, preferred_element_type=jnp.float32))
        s2 = jnp.sum(jnp.dot(v * v, ones_col, preferred_element_type=jnp.float32))
        mean = s1 * inv_n
        var = jnp.maximum(s2 * inv_n - mean * mean, 0.0)   # cancellation guard
        return mean, jax.lax.rsqrt(var + EPS)

    # ---- first 1x1 conv (bf16 MXU, f32 accumulate) ----
    h = jnp.dot(x.astype(jnp.bfloat16), W(w1_ref),
                preferred_element_type=jnp.float32)
    h = h + W(b1_ref)
    # speaker-embedding bias only enters block 0
    h = h + (k == 0).astype(jnp.float32) * ebias_ref[0]

    # ---- PReLU #1 ----
    h = jnp.where(h >= 0, h, a1 * h)
    if needs_tmask:
        h = h * tmask

    # ---- GlobalNorm #1: single pass, folded affine ----
    mean, r = gn_stats(h)
    scale_eff = W(gn1s_ref) * r                   # (1, Hp)
    bias_eff = W(gn1b_ref) - mean * scale_eff
    h = h * scale_eff + bias_eff

    # ---- depthwise conv: kernel 3, dilation d, zero "same" padding ----
    # y[t] = w0*h[t-d] + w1*h[t] + w2*h[t+d]; out-of-range taps read zero halo.
    dww = W(dww_ref)                              # (3, Hp)
    hbuf[pl.ds(dmaxp, t_pad), :] = (h * tmask) if needs_tmask else h
    y = h * dww[1:2, :] + W(dwb_ref)
    y = y + hbuf[pl.ds(dmaxp - d, t_pad), :] * dww[0:1, :]
    y = y + hbuf[pl.ds(dmaxp + d, t_pad), :] * dww[2:3, :]

    # ---- PReLU #2 + GlobalNorm #2 ----
    y = jnp.where(y >= 0, y, a2 * y)
    if needs_tmask:
        y = y * tmask
    mean, r = gn_stats(y)
    scale_eff = W(gn2s_ref) * r
    bias_eff = W(gn2b_ref) - mean * scale_eff
    y = y * scale_eff + bias_eff

    # ---- final 1x1 conv back to Cp (bf16 MXU) + residual; stays resident ----
    out_ref[0] = (x + jnp.dot(y.astype(jnp.bfloat16), W(w2_ref),
                              preferred_element_type=jnp.float32)
                  + W(b2_ref))


# --------------------------- weight packing ---------------------------

def pack_stacked_params(params_list, C, H, E):
    """Stack per-block params along a leading block axis, split off block 0's
    speaker-embedding rows, zero-pad channel dims to lane width (padded
    channels stay exactly zero end-to-end), and store the two big matmul
    weights in bfloat16 for the MXU."""
    NB = len(params_list)
    Cp = _round_up(C, LANE)
    Hp = _round_up(H, LANE)

    def zpad(a, shape, dtype=jnp.float32):
        pads = [(0, s - d) for d, s in zip(a.shape, shape)]
        return jnp.pad(a.astype(jnp.float32), pads).astype(dtype)

    w1x = jnp.zeros((NB, Cp, Hp), jnp.bfloat16)
    b1 = jnp.zeros((NB, 1, Hp), jnp.float32)
    gn1s = jnp.zeros((NB, 1, Hp), jnp.float32)
    gn1b = jnp.zeros((NB, 1, Hp), jnp.float32)
    dww = jnp.zeros((NB, 3, Hp), jnp.float32)
    dwb = jnp.zeros((NB, 1, Hp), jnp.float32)
    gn2s = jnp.zeros((NB, 1, Hp), jnp.float32)
    gn2b = jnp.zeros((NB, 1, Hp), jnp.float32)
    w2 = jnp.zeros((NB, Hp, Cp), jnp.bfloat16)
    b2 = jnp.zeros((NB, 1, Cp), jnp.float32)
    a = jnp.zeros((NB, 2), jnp.float32)
    w1e0 = jnp.zeros((E, Hp), jnp.float32)        # block-0 embedding rows (f32)

    for i, p in enumerate(params_list):
        if i == 0:
            w1e0 = zpad(p['w1'][:E], (E, Hp))
            w1x_i = p['w1'][E:]
        else:
            w1x_i = p['w1']
        w1x = w1x.at[i].set(zpad(w1x_i, (Cp, Hp), jnp.bfloat16))
        b1 = b1.at[i].set(zpad(p['b1'], (1, Hp)))
        gn1s = gn1s.at[i].set(zpad(p['gn1s'], (1, Hp)))
        gn1b = gn1b.at[i].set(zpad(p['gn1b'], (1, Hp)))
        dww = dww.at[i].set(zpad(p['dww'], (3, Hp)))
        dwb = dwb.at[i].set(zpad(p['dwb'], (1, Hp)))
        gn2s = gn2s.at[i].set(zpad(p['gn2s'], (1, Hp)))
        gn2b = gn2b.at[i].set(zpad(p['gn2b'], (1, Hp)))
        w2 = w2.at[i].set(zpad(p['w2'], (Hp, Cp), jnp.bfloat16))
        b2 = b2.at[i].set(zpad(p['b2'], (1, Cp)))
        a = a.at[i].set(jnp.array([p['a1'][0, 0], p['a2'][0, 0]], jnp.float32))

    return dict(a=a, w1e0=w1e0, w1x=w1x, b1=b1, gn1s=gn1s, gn1b=gn1b,
                dww=dww, dwb=dwb, gn2s=gn2s, gn2b=gn2b, w2=w2, b2=b2)


# --------------------------- public wrapper ---------------------------

def stacked_tcn_forward(x, user_emb, params_list, hidden_channels):
    """StackedTCN.forward.  x: (B, C, T), user_emb: (B, E).  Returns (B, C, T)."""
    B, C, T = x.shape
    E = user_emb.shape[1]
    H = hidden_channels
    NB = len(params_list)
    Cp = _round_up(C, LANE)
    Hp = _round_up(H, LANE)
    Tp = _round_up(T, 8)                          # full-sublane time tiles
    DMAX = 2 ** (NB - 1)                          # largest dilation in the stack
    DMAXP = _round_up(DMAX, 8)                    # sublane-aligned halo offset
    needs_tmask = (Tp != T)

    pk = pack_stacked_params(params_list, C, H, E)

    # Channels-last, channels zero-padded to lane width, time padded to 8.
    xt = jnp.pad(jnp.transpose(x, (0, 2, 1)).astype(jnp.float32),
                 ((0, 0), (0, Tp - T), (0, Cp - C)))          # (B, Tp, Cp)

    # Speaker-embedding bias of block 0, precomputed once per batch element.
    ebias = jnp.dot(user_emb.astype(jnp.float32), pk['w1e0'],
                    precision=jax.lax.Precision.HIGHEST)       # (B, Hp)
    ebias = ebias[:, None, :]                                  # (B, 1, Hp)

    worder = ['w1x', 'b1', 'gn1s', 'gn1b', 'dww', 'dwb', 'gn2s', 'gn2b', 'w2', 'b2']
    weights = [pk[n] for n in worder]
    w_bytes = sum(int(w.size) * w.dtype.itemsize for w in weights)

    vmem_cap = _vmem_capacity_bytes()
    # Keep the whole stacked weight set VMEM-resident unless it would eat the
    # VMEM budget (2x: conservative double-buffer accounting).
    weights_resident = (2 * w_bytes) <= (vmem_cap // 3)

    if weights_resident:
        def wspec(arr):
            nd = arr.ndim
            return pl.BlockSpec(arr.shape, lambda b, k, _nd=nd: (0,) * _nd)
    else:
        def wspec(arr):
            nrest = arr.ndim - 1
            return pl.BlockSpec((1,) + arr.shape[1:],
                                lambda b, k, _n=nrest: (k,) + (0,) * _n)

    act_spec = pl.BlockSpec((1, Tp, Cp), lambda b, k: (b, 0, 0))

    in_specs = ([pl.BlockSpec(memory_space=pltpu.MemorySpace.SMEM),  # PReLU scalars
                 pl.BlockSpec(memory_space=pl.ANY),                  # x stays in HBM
                 pl.BlockSpec((1, 1, Hp), lambda b, k: (b, 0, 0))]   # emb bias row
                + [wspec(w) for w in weights])

    # Explicit VMEM budget sized to the real working set (+ headroom), capped
    # at this generation's capacity.
    act_bytes = Tp * Cp * 4
    hbuf_bytes = (Tp + 2 * DMAXP) * Hp * 4
    temp_bytes = 6 * Tp * Hp * 4
    per_step_w = (w_bytes if weights_resident
                  else sum(int(w[0].size) * w.dtype.itemsize for w in weights))
    need = 2 * act_bytes + 2 * per_step_w + hbuf_bytes + temp_bytes + (2 << 20)
    vmem_limit = int(min(max(need, 8 << 20), vmem_cap))

    flops = int(B * NB * (4 * Tp * Cp * Hp + 4 * Tp * Hp + 30 * Tp * Hp))
    w_hbm = w_bytes if weights_resident else B * w_bytes
    bytes_accessed = int(2 * xt.size * 4 + ebias.size * 4 + pk['a'].size * 4 + w_hbm)
    cost = pl.CostEstimate(flops=flops, transcendentals=2 * B * NB,
                           bytes_accessed=bytes_accessed)

    out = pl.pallas_call(
        functools.partial(_fused_tcn_kernel, H, T, Tp, DMAXP,
                          weights_resident, needs_tmask),
        out_shape=jax.ShapeDtypeStruct((B, Tp, Cp), jnp.float32),
        grid=(B, NB),
        in_specs=in_specs,
        out_specs=act_spec,
        scratch_shapes=[pltpu.VMEM((Tp + 2 * DMAXP, Hp), jnp.float32),
                        pltpu.SemaphoreType.DMA(())],
        compiler_params=pltpu.CompilerParams(
            dimension_semantics=("parallel", "arbitrary"),
            vmem_limit_bytes=vmem_limit),
        cost_estimate=cost,
    )(pk['a'], xt, ebias, *weights)

    return jnp.transpose(out[:, :T, :C], (0, 2, 1))


# ---------------- deterministic parameter init (synthetic weights) ----------------

def init_block_params(key, cin, c, h):
    ks = jax.random.split(key, 6)

    def u(k, shape, fan_in):
        bound = 1.0 / float(fan_in) ** 0.5
        return jax.random.uniform(k, shape, jnp.float32, -bound, bound)

    return dict(
        w1=u(ks[0], (cin, h), cin),                 # first_conv weight (Cin, H)
        b1=u(ks[1], (1, h), cin),
        a1=jnp.full((1, 1), 0.25, jnp.float32),     # PReLU default init
        gn1s=jnp.ones((1, h), jnp.float32),
        gn1b=jnp.zeros((1, h), jnp.float32),
        dww=u(ks[2], (3, h), 3),                    # depthwise weight (k, H)
        dwb=u(ks[3], (1, h), 3),
        a2=jnp.full((1, 1), 0.25, jnp.float32),
        gn2s=jnp.ones((1, h), jnp.float32),
        gn2b=jnp.zeros((1, h), jnp.float32),
        w2=u(ks[4], (h, c), h),                     # last 1x1 conv weight (H, C)
        b2=u(ks[5], (1, c), h),
    )


# ---------------- pure-JAX reference (mirrors PyTorch NCL semantics) ----------------

def ref_forward(x, user_emb, params_list):
    for i, p in enumerate(params_list):
        d = 2 ** i
        res = x
        if i == 0:
            emb = jnp.broadcast_to(user_emb[:, :, None],
                                   user_emb.shape + (x.shape[2],))
            xin = jnp.concatenate([emb, x], axis=1)
        else:
            xin = x
        h = jnp.einsum('bct,ch->bht', xin, p['w1']) + p['b1'][0][None, :, None]
        h = jnp.where(h >= 0, h, p['a1'][0, 0] * h)
        mean = h.mean(axis=(1, 2), keepdims=True)
        var = ((h - mean) ** 2).mean(axis=(1, 2), keepdims=True)
        h = (p['gn1s'][0][None, :, None] * (h - mean) / jnp.sqrt(var + EPS)
             + p['gn1b'][0][None, :, None])
        T = h.shape[2]
        hp = jnp.pad(h, ((0, 0), (0, 0), (d, d)))
        h = (hp[:, :, 0:T] * p['dww'][0][None, :, None]
             + hp[:, :, d:d + T] * p['dww'][1][None, :, None]
             + hp[:, :, 2 * d:2 * d + T] * p['dww'][2][None, :, None]) \
            + p['dwb'][0][None, :, None]
        h = jnp.where(h >= 0, h, p['a2'][0, 0] * h)
        mean = h.mean(axis=(1, 2), keepdims=True)
        var = ((h - mean) ** 2).mean(axis=(1, 2), keepdims=True)
        h = (p['gn2s'][0][None, :, None] * (h - mean) / jnp.sqrt(var + EPS)
             + p['gn2b'][0][None, :, None])
        y = jnp.einsum('bht,hc->bct', h, p['w2']) + p['b2'][0][None, :, None]
        x = res + y
    return x


if __name__ == "__main__":
    # Small shapes: batch=2, tcn_input_channels=8, hidden=16, seq=16, user_emb_dim=8, 3 blocks.
    B, C, T, H, E = 2, 8, 16, 16, 8
    BLOCKS = 3

    key = jax.random.PRNGKey(0)
    kx, ke, kp = jax.random.split(key, 3)
    x = jax.random.normal(kx, (B, C, T), jnp.float32)            # PyTorch NCL input
    user_emb = jax.random.normal(ke, (B, E), jnp.float32)

    pkeys = jax.random.split(kp, BLOCKS)
    params_list = [init_block_params(pkeys[i], C + E if i == 0 else C, C, H)
                   for i in range(BLOCKS)]

    out = stacked_tcn_forward(x, user_emb, params_list, hidden_channels=H)
    out = jax.block_until_ready(out)

    ref = ref_forward(x, user_emb, params_list)
    assert out.shape == (B, C, T), out.shape
    # bf16 MXU operands -> relative tolerance (f32 accumulation keeps it tight).
    rel_err = float(jnp.max(jnp.abs(out - ref)) / (jnp.max(jnp.abs(ref)) + 1e-6))
    assert rel_err < 3e-2, f"mismatch vs reference, max rel err = {rel_err}"

    print("KERNEL_OK")
</pallas_src>

<mosaic_0001>
module attributes {stable_mosaic.version = 11 : i64} {
  func.func @_fused_tcn_kernel(%arg0: i32, %arg1: i32, %arg2: memref<3x2xf32, #tpu.memory_space<smem>>, %arg3: memref<2x16x128xf32, #tpu.memory_space<any>>, %arg4: memref<1x1x128xf32, #tpu.memory_space<vmem>>, %arg5: memref<3x128x128xbf16, #tpu.memory_space<vmem>>, %arg6: memref<3x1x128xf32, #tpu.memory_space<vmem>>, %arg7: memref<3x1x128xf32, #tpu.memory_space<vmem>>, %arg8: memref<3x1x128xf32, #tpu.memory_space<vmem>>, %arg9: memref<3x3x128xf32, #tpu.memory_space<vmem>>, %arg10: memref<3x1x128xf32, #tpu.memory_space<vmem>>, %arg11: memref<3x1x128xf32, #tpu.memory_space<vmem>>, %arg12: memref<3x1x128xf32, #tpu.memory_space<vmem>>, %arg13: memref<3x128x128xbf16, #tpu.memory_space<vmem>>, %arg14: memref<3x1x128xf32, #tpu.memory_space<vmem>>, %arg15: memref<1x16x128xf32, #tpu.memory_space<vmem>>, %arg16: memref<32x128xf32, #tpu.memory_space<vmem>>, %arg17: memref<!tpu.dma_semaphore, #tpu.memory_space<semaphore_mem>>) attributes {dimension_semantics = [#tpu.dimension_semantics<parallel>, #tpu.dimension_semantics<arbitrary>], iteration_bounds = array<i64: 2, 3>, scalar_prefetch = 0 : i64, scratch_operands = 2 : i64, tpu.core_type = #tpu.core_type<tc>, window_params = [{transform_indices = @transform_0, window_bounds = array<i64: 3, 2>}, {}, {transform_indices = @transform_2, window_bounds = array<i64: 1, 1, 128>}, {pipeline_mode = #tpu.pipeline_mode<synchronous>, transform_indices = @transform_3, window_bounds = array<i64: 3, 128, 128>}, {pipeline_mode = #tpu.pipeline_mode<synchronous>, transform_indices = @transform_4, window_bounds = array<i64: 3, 1, 128>}, {pipeline_mode = #tpu.pipeline_mode<synchronous>, transform_indices = @transform_5, window_bounds = array<i64: 3, 1, 128>}, {pipeline_mode = #tpu.pipeline_mode<synchronous>, transform_indices = @transform_6, window_bounds = array<i64: 3, 1, 128>}, {pipeline_mode = #tpu.pipeline_mode<synchronous>, transform_indices = @transform_7, window_bounds = array<i64: 3, 3, 128>}, {pipeline_mode = #tpu.pipeline_mode<synchronous>, transform_indices = @transform_8, window_bounds = array<i64: 3, 1, 128>}, {pipeline_mode = #tpu.pipeline_mode<synchronous>, transform_indices = @transform_9, window_bounds = array<i64: 3, 1, 128>}, {pipeline_mode = #tpu.pipeline_mode<synchronous>, transform_indices = @transform_10, window_bounds = array<i64: 3, 1, 128>}, {pipeline_mode = #tpu.pipeline_mode<synchronous>, transform_indices = @transform_11, window_bounds = array<i64: 3, 128, 128>}, {pipeline_mode = #tpu.pipeline_mode<synchronous>, transform_indices = @transform_12, window_bounds = array<i64: 3, 1, 128>}, {transform_indices = @transform_13, window_bounds = array<i64: 1, 16, 128>}]} {
    %c0_i32 = arith.constant 0 : i32
    %0 = arith.cmpi eq, %arg1, %c0_i32 : i32
    %1 = arith.extui %0 : i1 to i32
    %c0_i32_0 = arith.constant 0 : i32
    %2 = arith.cmpi ne, %1, %c0_i32_0 : i32
    scf.if %2 {
      %c0_i32_55 = arith.constant 0 : i32
      %c0_i32_56 = arith.constant 0 : i32
      %c0_i32_57 = arith.constant 0 : i32
      %146 = tpu.memref_slice %arg3[%arg0, %c0_i32_56, %c0_i32_57] : memref<2x16x128xf32, #tpu.memory_space<any>> -> memref<1x16x128xf32, #tpu.memory_space<any>>
      %147 = tpu.memref_squeeze %146 : memref<1x16x128xf32, #tpu.memory_space<any>> -> memref<16x128xf32, #tpu.memory_space<any>>
      %c0_i32_58 = arith.constant 0 : i32
      %c0_i32_59 = arith.constant 0 : i32
      %148 = tpu.memref_slice %arg15[%c0_i32_55, %c0_i32_58, %c0_i32_59] : memref<1x16x128xf32, #tpu.memory_space<vmem>> -> memref<1x16x128xf32, #tpu.memory_space<vmem>>
      %149 = tpu.memref_squeeze %148 : memref<1x16x128xf32, #tpu.memory_space<vmem>> -> memref<16x128xf32, #tpu.memory_space<vmem>>
      tpu.enqueue_dma source(%147 : memref<16x128xf32, #tpu.memory_space<any>>) target(%149 : memref<16x128xf32, #tpu.memory_space<vmem>>) target_semaphore(%arg17 : memref<!tpu.dma_semaphore, #tpu.memory_space<semaphore_mem>>)
      %cst_60 = arith.constant 0.000000e+00 : f32
      %150 = vector.broadcast %cst_60 : f32 to vector<8x128xf32>
      %c0_61 = arith.constant 0 : index
      %c0_62 = arith.constant 0 : index
      %151 = vector.load %arg16[%c0_61, %c0_62] : memref<32x128xf32, #tpu.memory_space<vmem>>, vector<8x128xf32>
      tpu.vector_store %arg16[%c0_61, %c0_62], %150 {strides = array<i32>} : memref<32x128xf32, #tpu.memory_space<vmem>>, vector<8x128xf32>,
      %cst_63 = arith.constant 0.000000e+00 : f32
      %152 = vector.broadcast %cst_63 : f32 to vector<8x128xf32>
      %c24 = arith.constant 24 : index
      %c0_64 = arith.constant 0 : index
      %153 = vector.load %arg16[%c24, %c0_64] : memref<32x128xf32, #tpu.memory_space<vmem>>, vector<8x128xf32>
      tpu.vector_store %arg16[%c24, %c0_64], %152 {strides = array<i32>} : memref<32x128xf32, #tpu.memory_space<vmem>>, vector<8x128xf32>,
      %c0_i32_65 = arith.constant 0 : i32
      %c0_i32_66 = arith.constant 0 : i32
      %c0_i32_67 = arith.constant 0 : i32
      %154 = tpu.memref_slice %arg3[%arg0, %c0_i32_66, %c0_i32_67] : memref<2x16x128xf32, #tpu.memory_space<any>> -> memref<1x16x128xf32, #tpu.memory_space<any>>
      %155 = tpu.memref_squeeze %154 : memref<1x16x128xf32, #tpu.memory_space<any>> -> memref<16x128xf32, #tpu.memory_space<any>>
      %c0_i32_68 = arith.constant 0 : i32
      %c0_i32_69 = arith.constant 0 : i32
      %156 = tpu.memref_slice %arg15[%c0_i32_65, %c0_i32_68, %c0_i32_69] : memref<1x16x128xf32, #tpu.memory_space<vmem>> -> memref<1x16x128xf32, #tpu.memory_space<vmem>>
      %157 = tpu.memref_squeeze %156 : memref<1x16x128xf32, #tpu.memory_space<vmem>> -> memref<16x128xf32, #tpu.memory_space<vmem>>
      tpu.wait_dma2 semaphore(%arg17 : memref<!tpu.dma_semaphore, #tpu.memory_space<semaphore_mem>>) src(%155 : memref<16x128xf32, #tpu.memory_space<any>>) dst(%157 : memref<16x128xf32, #tpu.memory_space<vmem>>)
    } else {
    }
    %c0 = arith.constant 0 : index
    %c0_1 = arith.constant 0 : index
    %c0_2 = arith.constant 0 : index
    %3 = vector.load %arg15[%c0, %c0_1, %c0_2] : memref<1x16x128xf32, #tpu.memory_space<vmem>>, vector<1x16x128xf32>
    %4 = vector.shape_cast %3 : vector<1x16x128xf32> to vector<16x128xf32>
    %c1_i32 = arith.constant 1 : i32
    %5 = arith.shli %c1_i32, %arg1 : i32
    %6 = arith.index_cast %arg1 : i32 to index
    %c0_3 = arith.constant 0 : index
    %7 = memref.load %arg2[%6, %c0_3] : memref<3x2xf32, #tpu.memory_space<smem>>
    %8 = arith.index_cast %arg1 : i32 to index
    %c1 = arith.constant 1 : index
    %9 = memref.load %arg2[%8, %c1] : memref<3x2xf32, #tpu.memory_space<smem>>
    %cst = arith.constant 1.000000e+00 : f32
    %10 = vector.broadcast %cst : f32 to vector<128x1xf32>
    %11 = arith.truncf %4 : vector<16x128xf32> to vector<16x128xbf16>
    %12 = arith.index_cast %arg1 : i32 to index
    %c0_4 = arith.constant 0 : index
    %c0_5 = arith.constant 0 : index
    %13 = vector.load %arg5[%12, %c0_4, %c0_5] : memref<3x128x128xbf16, #tpu.memory_space<vmem>>, vector<1x128x128xbf16>
    %14 = vector.shape_cast %13 : vector<1x128x128xbf16> to vector<128x128xbf16>
    %cst_6 = arith.constant dense<0.000000e+00> : vector<16x128xf32>
    %15 = tpu.matmul %11, %14, %cst_6 {dimension_numbers = #tpu.dot_dimension_numbers<[1], [0], [0], [1], [0, 0, 1, 1], [], []>} : vector<16x128xbf16>, vector<128x128xbf16>, vector<16x128xf32> -> vector<16x128xf32>
    %16 = arith.index_cast %arg1 : i32 to index
    %c0_7 = arith.constant 0 : index
    %c0_8 = arith.constant 0 : index
    %17 = vector.load %arg6[%16, %c0_7, %c0_8] : memref<3x1x128xf32, #tpu.memory_space<vmem>>, vector<1x1x128xf32>
    %18 = vector.shape_cast %17 : vector<1x1x128xf32> to vector<1x128xf32>
    %19 = vector.broadcast %18 : vector<1x128xf32> to vector<16x128xf32>
    %20 = arith.addf %15, %19 : vector<16x128xf32>
    %c0_i32_9 = arith.constant 0 : i32
    %21 = arith.cmpi eq, %arg1, %c0_i32_9 : i32
    %22 = arith.extui %21 : i1 to i32
    %23 = arith.sitofp %22 : i32 to f32
    %c0_10 = arith.constant 0 : index
    %c0_11 = arith.constant 0 : index
    %c0_12 = arith.constant 0 : index
    %24 = vector.load %arg4[%c0_10, %c0_11, %c0_12] : memref<1x1x128xf32, #tpu.memory_space<vmem>>, vector<1x1x128xf32>
    %25 = vector.shape_cast %24 : vector<1x1x128xf32> to vector<1x128xf32>
    %26 = vector.broadcast %23 : f32 to vector<1x128xf32>
    %27 = arith.mulf %26, %25 : vector<1x128xf32>
    %28 = vector.broadcast %27 : vector<1x128xf32> to vector<16x128xf32>
    %29 = arith.addf %20, %28 : vector<16x128xf32>
    %cst_13 = arith.constant 0.000000e+00 : f32
    %30 = vector.broadcast %cst_13 : f32 to vector<16x128xf32>
    %31 = arith.cmpf oge, %29, %30 : vector<16x128xf32>
    %32 = vector.broadcast %7 : f32 to vector<16x128xf32>
    %33 = arith.mulf %32, %29 : vector<16x128xf32>
    %34 = arith.select %31, %29, %33 : vector<16x128xi1>, vector<16x128xf32>
    %cst_14 = arith.constant dense<0.000000e+00> : vector<16x1xf32>
    %35 = tpu.matmul %34, %10, %cst_14 {dimension_numbers = #tpu.dot_dimension_numbers<[1], [0], [0], [1], [0, 0, 1, 1], [], []>} : vector<16x128xf32>, vector<128x1xf32>, vector<16x1xf32> -> vector<16x1xf32>
    %36 = vector.shape_cast %35 : vector<16x1xf32> to vector<1x16x1xf32>
    %cst_15 = arith.constant dense<0.000000e+00> : vector<1xf32>
    %37 = vector.multi_reduction <add>, %36, %cst_15 [1, 2] : vector<1x16x1xf32> to vector<1xf32>
    %38 = vector.shape_cast %37 : vector<1xf32> to vector<1x1x1xf32>
    %39 = vector.extract %38[0, 0, 0] : f32 from vector<1x1x1xf32>
    %40 = arith.mulf %34, %34 : vector<16x128xf32>
    %cst_16 = arith.constant dense<0.000000e+00> : vector<16x1xf32>
    %41 = tpu.matmul %40, %10, %cst_16 {dimension_numbers = #tpu.dot_dimension_numbers<[1], [0], [0], [1], [0, 0, 1, 1], [], []>} : vector<16x128xf32>, vector<128x1xf32>, vector<16x1xf32> -> vector<16x1xf32>
    %42 = vector.shape_cast %41 : vector<16x1xf32> to vector<1x16x1xf32>
    %cst_17 = arith.constant dense<0.000000e+00> : vector<1xf32>
    %43 = vector.multi_reduction <add>, %42, %cst_17 [1, 2] : vector<1x16x1xf32> to vector<1xf32>
    %44 = vector.shape_cast %43 : vector<1xf32> to vector<1x1x1xf32>
    %45 = vector.extract %44[0, 0, 0] : f32 from vector<1x1x1xf32>
    %cst_18 = arith.constant 3.906250e-03 : f32
    %46 = arith.mulf %39, %cst_18 : f32
    %cst_19 = arith.constant 3.906250e-03 : f32
    %47 = arith.mulf %45, %cst_19 : f32
    %48 = arith.mulf %46, %46 : f32
    %49 = arith.subf %47, %48 : f32
    %cst_20 = arith.constant 0.000000e+00 : f32
    %50 = arith.maximumf %49, %cst_20 : f32
    %cst_21 = arith.constant 9.99999997E-7 : f32
    %51 = arith.addf %50, %cst_21 : f32
    %52 = math.rsqrt %51 : f32
    %53 = arith.index_cast %arg1 : i32 to index
    %c0_22 = arith.constant 0 : index
    %c0_23 = arith.constant 0 : index
    %54 = vector.load %arg7[%53, %c0_22, %c0_23] : memref<3x1x128xf32, #tpu.memory_space<vmem>>, vector<1x1x128xf32>
    %55 = vector.shape_cast %54 : vector<1x1x128xf32> to vector<1x128xf32>
    %56 = vector.broadcast %52 : f32 to vector<1x128xf32>
    %57 = arith.mulf %55, %56 : vector<1x128xf32>
    %58 = arith.index_cast %arg1 : i32 to index
    %c0_24 = arith.constant 0 : index
    %c0_25 = arith.constant 0 : index
    %59 = vector.load %arg8[%58, %c0_24, %c0_25] : memref<3x1x128xf32, #tpu.memory_space<vmem>>, vector<1x1x128xf32>
    %60 = vector.shape_cast %59 : vector<1x1x128xf32> to vector<1x128xf32>
    %61 = vector.broadcast %46 : f32 to vector<1x128xf32>
    %62 = arith.mulf %61, %57 : vector<1x128xf32>
    %63 = arith.subf %60, %62 : vector<1x128xf32>
    %64 = vector.broadcast %57 : vector<1x128xf32> to vector<16x128xf32>
    %65 = arith.mulf %34, %64 : vector<16x128xf32>
    %66 = vector.broadcast %63 : vector<1x128xf32> to vector<16x128xf32>
    %67 = arith.addf %65, %66 : vector<16x128xf32>
    %68 = arith.index_cast %arg1 : i32 to index
    %c0_26 = arith.constant 0 : index
    %c0_27 = arith.constant 0 : index
    %69 = vector.load %arg9[%68, %c0_26, %c0_27] : memref<3x3x128xf32, #tpu.memory_space<vmem>>, vector<1x3x128xf32>
    %70 = vector.shape_cast %69 : vector<1x3x128xf32> to vector<3x128xf32>
    %c8 = arith.constant 8 : index
    %c0_28 = arith.constant 0 : index
    %71 = vector.load %arg16[%c8, %c0_28] : memref<32x128xf32, #tpu.memory_space<vmem>>, vector<16x128xf32>
    tpu.vector_store %arg16[%c8, %c0_28], %67 {strides = array<i32>} : memref<32x128xf32, #tpu.memory_space<vmem>>, vector<16x128xf32>,
    %72 = vector.extract_strided_slice %70 {offsets = [1, 0], sizes = [1, 128], strides = [1, 1]} : vector<3x128xf32> to vector<1x128xf32>
    %73 = vector.broadcast %72 : vector<1x128xf32> to vector<16x128xf32>
    %74 = arith.mulf %67, %73 : vector<16x128xf32>
    %75 = arith.index_cast %arg1 : i32 to index
    %c0_29 = arith.constant 0 : index
    %c0_30 = arith.constant 0 : index
    %76 = vector.load %arg10[%75, %c0_29, %c0_30] : memref<3x1x128xf32, #tpu.memory_space<vmem>>, vector<1x1x128xf32>
    %77 = vector.shape_cast %76 : vector<1x1x128xf32> to vector<1x128xf32>
    %78 = vector.broadcast %77 : vector<1x128xf32> to vector<16x128xf32>
    %79 = arith.addf %74, %78 : vector<16x128xf32>
    %c8_i32 = arith.constant 8 : i32
    %80 = arith.subi %c8_i32, %5 : i32
    %81 = arith.index_cast %80 : i32 to index
    %c0_31 = arith.constant 0 : index
    %82 = vector.load %arg16[%81, %c0_31] : memref<32x128xf32, #tpu.memory_space<vmem>>, vector<16x128xf32>
    %83 = vector.extract_strided_slice %70 {offsets = [0, 0], sizes = [1, 128], strides = [1, 1]} : vector<3x128xf32> to vector<1x128xf32>
    %84 = vector.broadcast %83 : vector<1x128xf32> to vector<16x128xf32>
    %85 = arith.mulf %82, %84 : vector<16x128xf32>
    %86 = arith.addf %79, %85 : vector<16x128xf32>
    %c8_i32_32 = arith.constant 8 : i32
    %87 = arith.addi %c8_i32_32, %5 : i32
    %88 = arith.index_cast %87 : i32 to index
    %c0_33 = arith.constant 0 : index
    %89 = vector.load %arg16[%88, %c0_33] : memref<32x128xf32, #tpu.memory_space<vmem>>, vector<16x128xf32>
    %90 = vector.extract_strided_slice %70 {offsets = [2, 0], sizes = [1, 128], strides = [1, 1]} : vector<3x128xf32> to vector<1x128xf32>
    %91 = vector.broadcast %90 : vector<1x128xf32> to vector<16x128xf32>
    %92 = arith.mulf %89, %91 : vector<16x128xf32>
    %93 = arith.addf %86, %92 : vector<16x128xf32>
    %cst_34 = arith.constant 0.000000e+00 : f32
    %94 = vector.broadcast %cst_34 : f32 to vector<16x128xf32>
    %95 = arith.cmpf oge, %93, %94 : vector<16x128xf32>
    %96 = vector.broadcast %9 : f32 to vector<16x128xf32>
    %97 = arith.mulf %96, %93 : vector<16x128xf32>
    %98 = arith.select %95, %93, %97 : vector<16x128xi1>, vector<16x128xf32>
    %cst_35 = arith.constant dense<0.000000e+00> : vector<16x1xf32>
    %99 = tpu.matmul %98, %10, %cst_35 {dimension_numbers = #tpu.dot_dimension_numbers<[1], [0], [0], [1], [0, 0, 1, 1], [], []>} : vector<16x128xf32>, vector<128x1xf32>, vector<16x1xf32> -> vector<16x1xf32>
    %100 = vector.shape_cast %99 : vector<16x1xf32> to vector<1x16x1xf32>
    %cst_36 = arith.constant dense<0.000000e+00> : vector<1xf32>
    %101 = vector.multi_reduction <add>, %100, %cst_36 [1, 2] : vector<1x16x1xf32> to vector<1xf32>
    %102 = vector.shape_cast %101 : vector<1xf32> to vector<1x1x1xf32>
    %103 = vector.extract %102[0, 0, 0] : f32 from vector<1x1x1xf32>
    %104 = arith.mulf %98, %98 : vector<16x128xf32>
    %cst_37 = arith.constant dense<0.000000e+00> : vector<16x1xf32>
    %105 = tpu.matmul %104, %10, %cst_37 {dimension_numbers = #tpu.dot_dimension_numbers<[1], [0], [0], [1], [0, 0, 1, 1], [], []>} : vector<16x128xf32>, vector<128x1xf32>, vector<16x1xf32> -> vector<16x1xf32>
    %106 = vector.shape_cast %105 : vector<16x1xf32> to vector<1x16x1xf32>
    %cst_38 = arith.constant dense<0.000000e+00> : vector<1xf32>
    %107 = vector.multi_reduction <add>, %106, %cst_38 [1, 2] : vector<1x16x1xf32> to vector<1xf32>
    %108 = vector.shape_cast %107 : vector<1xf32> to vector<1x1x1xf32>
    %109 = vector.extract %108[0, 0, 0] : f32 from vector<1x1x1xf32>
    %cst_39 = arith.constant 3.906250e-03 : f32
    %110 = arith.mulf %103, %cst_39 : f32
    %cst_40 = arith.constant 3.906250e-03 : f32
    %111 = arith.mulf %109, %cst_40 : f32
    %112 = arith.mulf %110, %110 : f32
    %113 = arith.subf %111, %112 : f32
    %cst_41 = arith.constant 0.000000e+00 : f32
    %114 = arith.maximumf %113, %cst_41 : f32
    %cst_42 = arith.constant 9.99999997E-7 : f32
    %115 = arith.addf %114, %cst_42 : f32
    %116 = math.rsqrt %115 : f32
    %117 = arith.index_cast %arg1 : i32 to index
    %c0_43 = arith.constant 0 : index
    %c0_44 = arith.constant 0 : index
    %118 = vector.load %arg11[%117, %c0_43, %c0_44] : memref<3x1x128xf32, #tpu.memory_space<vmem>>, vector<1x1x128xf32>
    %119 = vector.shape_cast %118 : vector<1x1x128xf32> to vector<1x128xf32>
    %120 = vector.broadcast %116 : f32 to vector<1x128xf32>
    %121 = arith.mulf %119, %120 : vector<1x128xf32>
    %122 = arith.index_cast %arg1 : i32 to index
    %c0_45 = arith.constant 0 : index
    %c0_46 = arith.constant 0 : index
    %123 = vector.load %arg12[%122, %c0_45, %c0_46] : memref<3x1x128xf32, #tpu.memory_space<vmem>>, vector<1x1x128xf32>
    %124 = vector.shape_cast %123 : vector<1x1x128xf32> to vector<1x128xf32>
    %125 = vector.broadcast %110 : f32 to vector<1x128xf32>
    %126 = arith.mulf %125, %121 : vector<1x128xf32>
    %127 = arith.subf %124, %126 : vector<1x128xf32>
    %128 = vector.broadcast %121 : vector<1x128xf32> to vector<16x128xf32>
    %129 = arith.mulf %98, %128 : vector<16x128xf32>
    %130 = vector.broadcast %127 : vector<1x128xf32> to vector<16x128xf32>
    %131 = arith.addf %129, %130 : vector<16x128xf32>
    %132 = arith.truncf %131 : vector<16x128xf32> to vector<16x128xbf16>
    %133 = arith.index_cast %arg1 : i32 to index
    %c0_47 = arith.constant 0 : index
    %c0_48 = arith.constant 0 : index
    %134 = vector.load %arg13[%133, %c0_47, %c0_48] : memref<3x128x128xbf16, #tpu.memory_space<vmem>>, vector<1x128x128xbf16>
    %135 = vector.shape_cast %134 : vector<1x128x128xbf16> to vector<128x128xbf16>
    %cst_49 = arith.constant dense<0.000000e+00> : vector<16x128xf32>
    %136 = tpu.matmul %132, %135, %cst_49 {dimension_numbers = #tpu.dot_dimension_numbers<[1], [0], [0], [1], [0, 0, 1, 1], [], []>} : vector<16x128xbf16>, vector<128x128xbf16>, vector<16x128xf32> -> vector<16x128xf32>
    %137 = arith.addf %4, %136 : vector<16x128xf32>
    %138 = arith.index_cast %arg1 : i32 to index
    %c0_50 = arith.constant 0 : index
    %c0_51 = arith.constant 0 : index
    %139 = vector.load %arg14[%138, %c0_50, %c0_51] : memref<3x1x128xf32, #tpu.memory_space<vmem>>, vector<1x1x128xf32>
    %140 = vector.shape_cast %139 : vector<1x1x128xf32> to vector<1x128xf32>
    %141 = vector.broadcast %140 : vector<1x128xf32> to vector<16x128xf32>
    %142 = arith.addf %137, %141 : vector<16x128xf32>
    %c0_52 = arith.constant 0 : index
    %c0_53 = arith.constant 0 : index
    %c0_54 = arith.constant 0 : index
    %143 = vector.load %arg15[%c0_52, %c0_53, %c0_54] : memref<1x16x128xf32, #tpu.memory_space<vmem>>, vector<1x16x128xf32>
    %144 = vector.shape_cast %143 : vector<1x16x128xf32> to vector<16x128xf32>
    %145 = vector.shape_cast %142 : vector<16x128xf32> to vector<1x16x128xf32>
    tpu.vector_store %arg15[%c0_52, %c0_53, %c0_54], %145 {strides = array<i32>} : memref<1x16x128xf32, #tpu.memory_space<vmem>>, vector<1x16x128xf32>,
    return
  }
  func.func @transform_0(%arg0: i32, %arg1: i32) -> (i32, i32) {
    %c0_i32 = arith.constant 0 : i32
    %c0_i32_0 = arith.constant 0 : i32
    %c0_i32_1 = arith.constant 0 : i32
    return %c0_i32, %c0_i32_0 : i32, i32
  }
  func.func @transform_2(%arg0: i32, %arg1: i32) -> (i32, i32, i32) {
    %c0_i32 = arith.constant 0 : i32
    %c0_i32_0 = arith.constant 0 : i32
    %c0_i32_1 = arith.constant 0 : i32
    return %arg0, %c0_i32, %c0_i32_0 : i32, i32, i32
  }
  func.func @transform_3(%arg0: i32, %arg1: i32) -> (i32, i32, i32) {
    %c0_i32 = arith.constant 0 : i32
    %c0_i32_0 = arith.constant 0 : i32
    %c0_i32_1 = arith.constant 0 : i32
    %c0_i32_2 = arith.constant 0 : i32
    return %c0_i32, %c0_i32_0, %c0_i32_1 : i32, i32, i32
  }
  func.func @transform_4(%arg0: i32, %arg1: i32) -> (i32, i32, i32) {
    %c0_i32 = arith.constant 0 : i32
    %c0_i32_0 = arith.constant 0 : i32
    %c0_i32_1 = arith.constant 0 : i32
    %c0_i32_2 = arith.constant 0 : i32
    return %c0_i32, %c0_i32_0, %c0_i32_1 : i32, i32, i32
  }
  func.func @transform_5(%arg0: i32, %arg1: i32) -> (i32, i32, i32) {
    %c0_i32 = arith.constant 0 : i32
    %c0_i32_0 = arith.constant 0 : i32
    %c0_i32_1 = arith.constant 0 : i32
    %c0_i32_2 = arith.constant 0 : i32
    return %c0_i32, %c0_i32_0, %c0_i32_1 : i32, i32, i32
  }
  func.func @transform_6(%arg0: i32, %arg1: i32) -> (i32, i32, i32) {
    %c0_i32 = arith.constant 0 : i32
    %c0_i32_0 = arith.constant 0 : i32
    %c0_i32_1 = arith.constant 0 : i32
    %c0_i32_2 = arith.constant 0 : i32
    return %c0_i32, %c0_i32_0, %c0_i32_1 : i32, i32, i32
  }
  func.func @transform_7(%arg0: i32, %arg1: i32) -> (i32, i32, i32) {
    %c0_i32 = arith.constant 0 : i32
    %c0_i32_0 = arith.constant 0 : i32
    %c0_i32_1 = arith.constant 0 : i32
    %c0_i32_2 = arith.constant 0 : i32
    return %c0_i32, %c0_i32_0, %c0_i32_1 : i32, i32, i32
  }
  func.func @transform_8(%arg0: i32, %arg1: i32) -> (i32, i32, i32) {
    %c0_i32 = arith.constant 0 : i32
    %c0_i32_0 = arith.constant 0 : i32
    %c0_i32_1 = arith.constant 0 : i32
    %c0_i32_2 = arith.constant 0 : i32
    return %c0_i32, %c0_i32_0, %c0_i32_1 : i32, i32, i32
  }
  func.func @transform_9(%arg0: i32, %arg1: i32) -> (i32, i32, i32) {
    %c0_i32 = arith.constant 0 : i32
    %c0_i32_0 = arith.constant 0 : i32
    %c0_i32_1 = arith.constant 0 : i32
    %c0_i32_2 = arith.constant 0 : i32
    return %c0_i32, %c0_i32_0, %c0_i32_1 : i32, i32, i32
  }
  func.func @transform_10(%arg0: i32, %arg1: i32) -> (i32, i32, i32) {
    %c0_i32 = arith.constant 0 : i32
    %c0_i32_0 = arith.constant 0 : i32
    %c0_i32_1 = arith.constant 0 : i32
    %c0_i32_2 = arith.constant 0 : i32
    return %c0_i32, %c0_i32_0, %c0_i32_1 : i32, i32, i32
  }
  func.func @transform_11(%arg0: i32, %arg1: i32) -> (i32, i32, i32) {
    %c0_i32 = arith.constant 0 : i32
    %c0_i32_0 = arith.constant 0 : i32
    %c0_i32_1 = arith.constant 0 : i32
    %c0_i32_2 = arith.constant 0 : i32
    return %c0_i32, %c0_i32_0, %c0_i32_1 : i32, i32, i32
  }
  func.func @transform_12(%arg0: i32, %arg1: i32) -> (i32, i32, i32) {
    %c0_i32 = arith.constant 0 : i32
    %c0_i32_0 = arith.constant 0 : i32
    %c0_i32_1 = arith.constant 0 : i32
    %c0_i32_2 = arith.constant 0 : i32
    return %c0_i32, %c0_i32_0, %c0_i32_1 : i32, i32, i32
  }
  func.func @transform_13(%arg0: i32, %arg1: i32) -> (i32, i32, i32) {
    %c0_i32 = arith.constant 0 : i32
    %c0_i32_0 = arith.constant 0 : i32
    %c0_i32_1 = arith.constant 0 : i32
    return %arg0, %c0_i32, %c0_i32_0 : i32, i32, i32
  }
}

</mosaic_0001>

<bundles_post_ra>
// kernel: tpu_custom_call.1
= control target key start
LH: loop header
LB: loop body
LE: loop exit
PB: predicated region body
PF: predicated region fallthrough
CT: control target
= control target key end

     0   :  { %s2747_s0 = inlined_call_operand.vmem [shape: f32[3,2], index: 0, kind: input, shape index: {}]   ;;  %s2748_s1 = inlined_call_operand.hbm [shape: f32[2,16,128], index: 1, kind: input, shape index: {}]   ;;  %s2749_s2 = inlined_call_operand.hbm [shape: f32[2,1,128], index: 2, kind: input, shape index: {}]   ;;  %s2750_s3 = inlined_call_operand.hbm [shape: bf16[3,128,128], index: 3, kind: input, shape index: {}]   ;;  %s2751_s4 = inlined_call_operand.vmem [shape: f32[3,1,128], index: 4, kind: input, shape index: {}]   ;;  %s2752_s5 = inlined_call_operand.vmem [shape: f32[3,1,128], index: 5, kind: input, shape index: {}]   ;;  %s2753_s6 = inlined_call_operand.vmem [shape: f32[3,1,128], index: 6, kind: input, shape index: {}]   ;;  %s2754_s7 = inlined_call_operand.vmem [shape: f32[3,3,128], index: 7, kind: input, shape index: {}]   ;;  %s2755_s8 = inlined_call_operand.vmem [shape: f32[3,1,128], index: 8, kind: input, shape index: {}]   ;;  %s2756_s9 = inlined_call_operand.vmem [shape: f32[3,1,128], index: 9, kind: input, shape index: {}]   ;;  %s2757_s10 = inlined_call_operand.vmem [shape: f32[3,1,128], index: 10, kind: input, shape index: {}]   ;;  %s2758_s11 = inlined_call_operand.hbm [shape: bf16[3,128,128], index: 11, kind: input, shape index: {}]   ;;  %s2759_s12 = inlined_call_operand.vmem [shape: f32[3,1,128], index: 12, kind: input, shape index: {}]   ;;  %s2760_s13 = inlined_call_operand.hbm [shape: f32[2,16,128], index: 13, kind: output, shape index: {}]  }
   0x1   :  { %2772 = sst [smem:[#allocation25_spill]] %s2747_s0 }
   0x2   :  { %2773 = sst [smem:[#allocation26_spill]] %s2748_s1 }
   0x3   :  { %2774 = sst [smem:[#allocation27_spill]] %s2749_s2 }
   0x4   :  { %2775 = sst [smem:[#allocation28_spill]] %s2750_s3 }
   0x5   :  { %2776 = sst [smem:[#allocation29_spill]] %s2751_s4 }
   0x6   :  { %2777 = sst [smem:[#allocation30_spill]] %s2752_s5 }
   0x7   :  { %2778 = sst [smem:[#allocation31_spill]] %s2755_s8 }
   0x8   :  { %2779 = sst [smem:[#allocation32_spill]] %s2756_s9 }
   0x9   :  { %2780 = sst [smem:[#allocation33_spill]] %s2757_s10 }
   0xa   :  { %2781 = sst [smem:[#allocation34_spill]] %s2758_s11 }
   0xb   :  { %2782 = sst [smem:[#allocation35_spill]] %s2759_s12 }
   0xc   :  { %2783 = sst [smem:[#allocation36_spill]] %s2760_s13 }
   0xd   :  { %18 = vsyncpa [#allocation7], 0 }
   0xe   :  { %19 = vsyncpa [#allocation5], 0 }
   0xf   :  { %21 = vsyncpa [#allocation5 + $0x1], 0 }
  0x10   :  { %22 = vsyncpa [#allocation10], 0 }
  0x11   :  { %23 = vsyncpa [#allocation6], 0 }
  0x12   :  { %25 = vsyncpa [#allocation6 + $0x1], 0  ;;  %s2253_s25 = smov 0   ;;  %s2255_s26 = smov 0  }
  0x13   :  { %s2257_s27 = smov 0   ;;  %s2259_s28 = smov 0  }
  0x14   :  { %s2261_s29 = smov 0   ;;  %s2263_s30 = smov 0  }
  0x15   :  { %s2265_s14 = smov 0   ;;  %s2267_s15 = smov 0  }
  0x16 LB: > { %2784 = sst [smem:[#allocation22_spill]] %s2137_s25  ;;  %s1395_s16 = sadd.s32 4294967295, %s2165_s15   ;;  %s2165_s15 = sphi %s2267_s15, %s31_s15   ;;  %s2161_s14 = sphi %s2265_s14, %s2825_s14   ;;  %s2157_s30 = sphi %s2263_s30, %s2824_s30   ;;  %s2153_s29 = sphi %s2261_s29, %s2823_s29   ;;  %s2149_s28 = sphi %s2259_s28, %s2822_s28   ;;  %s2145_s27 = sphi %s2257_s27, %s2821_s27   ;;  %s2141_s26 = sphi %s2255_s26, %s2820_s26   ;;  %s2137_s25 = sphi %s2253_s25, %s2819_s25  }
  0x17   : > { %s1396_s17 = sadd.s32 4294967294, %s2165_s15   ;;  %p84_p0 = scmp.ne.s32.totalorder %s2141_s26, %s2137_s25 }
  0x18   : > { %p2297_p1 = scmp.eq.s32.totalorder %s1395_s16, 0  ;;  %p2301_p2 = scmp.eq.s32.totalorder %s1395_s16, 5 }
  0x19   : > { %p324_p3 = scmp.eq.s32.totalorder %s1396_s17, 5  ;;  %p1397_p5 = scmp.ge.s32.totalorder %s2165_s15, 1 }
  0x1a   : > { %s2785_s18 = scalar_select %p2297_p1, 1, 0 }
  0x1b   : > { %s2786_s19 = scalar_select %p2301_p2, 1, 0 }
  0x1c   : > { %p2307_p4 = por %p2297_p1, %p84_p0  ;;  %p2312_p6 = por %p324_p3, %p84_p0 }
  0x1d   : > { %p331_p7 = scmp.lt.s32.totalorder %s2165_s15, 7  ;;  %s2167_s23 = smov [#allocation9]  }
  0x1e   : > { %s2787_s20 = scalar_select %p2307_p4, 1, 0 }
  0x1f   : > { %s2788_s21 = scalar_select %p2312_p6, 1, 0 }
  0x20   : > { %p2317_p8 = pnand %p1397_p5, %p331_p7  ;;  %s354_s24 = sshll.u32 %s2167_s23, 4  ;;  %s355_s24 = int_to_ptr.vmem [resolvable:$true] %s354_s24 }
  0x21   : > { %2789 = sst [smem:[#allocation23_spill]] %s2788_s21  ;;  %s2792_s0 = sld [smem:[#allocation25_spill]] }
  0x22   : > { %s2790_s22 = scalar_select %p2317_p8, 1, 0 }
  0x23   : > { %p1809_p9 = pneg %p2317_p8  ;;  %s2793_s3 = sld [smem:[#allocation28_spill]] }
  0x25   : > { %p2325_p10 = pnand %p1809_p9, %p2297_p1 }
  0x27   : > { %s344_s21 = sshll.u32 %s2792_s0, 4  ;;  %p2340_p12 = pneg %p2325_p10  ;;  %s345_s21 = int_to_ptr.vmem [resolvable:$true] %s344_s21 }
  0x29   : > { %s1932_s10 = scalar_lea.hbm %s2793_s3, 3072 }
  0x2a   : > { %p1933_p11 = scmp.ne.s32.totalorder %s2793_s3, %s1932_s10  ;;  %p1939_p3 = scmp.lt.u32.totalorder %s1932_s10, %s2793_s3 }
  0x2c   : > { %p1935_p13 = pnand %p2340_p12, %p1933_p11 }
  0x2e   : > { %p1936_p0 = pneg %p1935_p13 }
  0x30   : > { %p1941_p5 = pnand %p1939_p3, %p1936_p0 }
  0x32   : > { %1944 = shalt.err (!%p1941_p5)
}
  0x33   : > { %s1945_s12 = scalar_lea.vmem %s355_s24, 3072  ;;  %p1953_p4 = scmp.lt.s32.totalorder %s355_s24, %s355_s24 }
  0x34   : > { %p1946_p7 = scmp.ne.s32.totalorder %s355_s24, %s1945_s12  ;;  %p1954_p1 = scmp.lt.s32.totalorder %s1945_s12, %s1945_s12 }
  0x36   : > { %p1948_p9 = pnand %p1946_p7, %p2340_p12  ;;  %p1955_p8 = por %p1954_p1, %p1953_p4 }
  0x38   : > { %p1949_p6 = pneg %p1948_p9 }
  0x3a   : > { %p1956_p2 = pnand %p1955_p8, %p1949_p6 }
  0x3c   : > { %1959 = shalt.err (!%p1956_p2)
}
  0x3d   : > { %s2768_s8 = smov 64   ;;  %s2769_s9 = smov 4  }
  0x3e   : > { %1815 = dma.hbm_to_vmem [thread:$0]  (!%p2325_p10), %s2793_s3, 3072, %s355_s24, [#allocation10], %s2768_s8, %s2768_s8, %s2769_s9  }
  0x3f   : > { %s1960_s25 = scalar_lea.vmem %s345_s21, 64  ;;  %p1968_p4 = scmp.lt.s32.totalorder %s345_s21, %s345_s21 }
  0x40   : > { %p1961_p11 = scmp.ne.s32.totalorder %s345_s21, %s1960_s25  ;;  %p1969_p2 = scmp.lt.s32.totalorder %s1960_s25, %s1960_s25 }
  0x42   : > { %p1963_p13 = pnand %p1961_p11, %p2340_p12  ;;  %p1970_p6 = por %p1969_p2, %p1968_p4 }
  0x44   : > { %p1964_p1 = pneg %p1963_p13 }
  0x46   : > { %p1971_p8 = pnand %p1970_p6, %p1964_p1 }
  0x48   : > { %1974 = shalt.err (!%p1971_p8)
}
  0x49   : > { %s2170_s17 = smov [#allocation4]   ;;  %s2171_s12 = smov [#allocation11]  }
  0x4a   : > { %1812 = dma.vmem_to_smem (!%p2325_p10), %s345_s21, 64, %s2170_s17, [#allocation7]  }
  0x4b   : > { %s388_s0 = sshll.u32 %s2171_s12, 4  ;;  %s2795_s11 = sld [smem:[#allocation34_spill]]  ;;  %s389_s0 = int_to_ptr.vmem [resolvable:$true] %s388_s0 }
  0x51   : > { %s1975_s13 = scalar_lea.hbm %s2795_s11, 3072 }
  0x52   : > { %p1976_p0 = scmp.ne.s32.totalorder %s2795_s11, %s1975_s13  ;;  %p1982_p7 = scmp.lt.u32.totalorder %s1975_s13, %s2795_s11 }
  0x54   : > { %p1978_p3 = pnand %p1976_p0, %p2340_p12 }
  0x56   : > { %p1979_p5 = pneg %p1978_p3 }
  0x58   : > { %p1984_p9 = pnand %p1982_p7, %p1979_p5 }
  0x5a   : > { %1987 = shalt.err (!%p1984_p9)
}
  0x5b   : > { %s1988_s21 = scalar_lea.vmem %s389_s0, 3072  ;;  %p1996_p4 = scmp.lt.s32.totalorder %s389_s0, %s389_s0 }
  0x5c   : > { %p1989_p11 = scmp.ne.s32.totalorder %s389_s0, %s1988_s21  ;;  %p1997_p2 = scmp.lt.s32.totalorder %s1988_s21, %s1988_s21 }
  0x5e   : > { %p1991_p13 = pnand %p1989_p11, %p2340_p12  ;;  %p1998_p6 = por %p1997_p2, %p1996_p4 }
  0x60   : > { %p1992_p1 = pneg %p1991_p13 }
  0x62   : > { %p1999_p8 = pnand %p1998_p6, %p1992_p1 }
  0x64   : > { %2002 = shalt.err (!%p1999_p8)
}
  0x65   : > { %s2796_s8 = smov 4   ;;  %s2797_s9 = smov 64  }
  0x66   : > { %1818 = dma.hbm_to_vmem [thread:$0]  (!%p2325_p10), %s2795_s11, 3072, %s389_s0, [#allocation10], %s2797_s9, %s2797_s9, %s2796_s8  }
  0x67   : > { %s40_s16 = sadd.s32 1, %s2157_s30  ;;  %s43_s23 = sadd.s32 1, %s2161_s14 }
  0x68   : > { %p41_p12 = scmp.ge.s32.totalorder %s40_s16, 3  ;;  %s71_s12 = sadd.s32 1, %s2145_s27 }
  0x69   : > { %p78_p0 = scmp.ne.s32.totalorder %s2145_s27, %s2141_s26  ;;  %p79_p3 = scmp.eq.s32.totalorder %s2165_s15, 0 }
  0x6a   : > { %s2827_s16 = smov (%p41_p12, %s40_s16), 0  ;;  %s2829_s23 = smov (!%p41_p12, %s43_s23), %s2161_s14 }
  0x6b   : > { %p2798_p5 = scmp.ne.s32.totalorder %s2786_s19, 0  ;;  %p45_p9 = scmp.ge.s32.totalorder %s2829_s23, 2 }
  0x6c   : > { %p1830_p11 = scmp.lt.s32.totalorder %s2165_s15, 6  ;;  %p80_p13 = por %p79_p3, %p78_p0 }
  0x6d   : > { %p2395_p7 = por %p2798_p5, %p78_p0  ;;  %s405_s0 = sand.u32 1, %s2145_s27  }
  0x6e   : > { %s2831_s23 = smov (%p45_p9, %s2829_s23), 0  ;;  %s1402_s13 = sshll.u32 %s2161_s14, 4 }
  0x6f   : > { %2800 = sst [smem:[#allocation24_spill]] %s2831_s23  ;;  %s68_s10 = ssub.s32 %s2161_s14, %s2831_s23 }
  0x70   : > { %p69_p10 = scmp.eq.s32.totalorder %s68_s10, 0  ;;  %s2801_s2 = sld [smem:[#allocation27_spill]] }
  0x71   : > { %s408_s19 = scalar_lea.vmem [#allocation8], %s405_s0  ;;  %p2411_p1 = pnand %p1830_p11, %p80_p13 }
  0x72   : > { %s415_s9 = sshll.u32 %s408_s19, 4  ;;  %s406_s10 = scalar_lea.sflag [#allocation5], %s405_s0  ;;  %s2418_s9 = int_to_ptr.vmem [resolvable:$true] %s415_s9 }
  0x73   : > { %s2416_s17 = scalar_select %p69_p10, %s2145_s27, %s71_s12  }
  0x74   : > { %p2005_p2 = pneg %p2411_p1 }
  0x76   : > { %s2409_s8 = scalar_lea.hbm %s2801_s2, %s1402_s13  ;;  %s2008_s19 = scalar_lea.hbm %s2801_s2, 32 }
  0x77   : > { %s2003_s25 = scalar_lea.hbm %s2409_s8, 16  ;;  %p2009_p12 = scmp.lt.u32.totalorder %s2409_s8, %s2801_s2 }
  0x78   : > { %p2004_p4 = scmp.ne.s32.totalorder %s2409_s8, %s2003_s25  ;;  %p2010_p0 = scmp.lt.u32.totalorder %s2008_s19, %s2003_s25 }
  0x79   : > { %p2012_p5 = scmp.lt.u32.totalorder %s2003_s25, %s2409_s8 }
  0x7a   : > { %p2006_p6 = pnand %p2005_p2, %p2004_p4  ;;  %p2011_p3 = por %p2010_p0, %p2009_p12 }
  0x7c   : > { %p2007_p8 = pneg %p2006_p6  ;;  %p2013_p9 = por %p2012_p5, %p2011_p3 }
  0x7e   : > { %p2014_p11 = pnand %p2013_p9, %p2007_p8 }
  0x80   : > { %2017 = shalt.err (!%p2014_p11)
}
  0x81   : > { %s2018_s12 = scalar_lea.vmem %s2418_s9, 16  ;;  %s2172_s0 = smov [#allocation8]  }
  0x82   : > { %p2019_p13 = scmp.ne.s32.totalorder %s2418_s9, %s2018_s12  ;;  %s2023_s13 = sshll.u32 %s2172_s0, 4  ;;  %s2024_s13 = int_to_ptr.vmem [resolvable:$false] %s2023_s13 }
  0x83   : > { %s2025_s11 = scalar_lea.vmem %s2024_s13, 32  ;;  %p2026_p6 = scmp.lt.s32.totalorder %s2418_s9, %s2024_s13 }
  0x84   : > { %p2021_p10 = pnand %p2019_p13, %p2005_p2  ;;  %p2027_p12 = scmp.lt.s32.totalorder %s2025_s11, %s2018_s12 }
  0x86   : > { %p2022_p4 = pneg %p2021_p10  ;;  %p2028_p0 = por %p2027_p12, %p2026_p6 }
  0x88   : > { %p2029_p3 = pnand %p2028_p0, %p2022_p4 }
  0x8a   : > { %2032 = shalt.err (!%p2029_p3)
}
  0x8b   : > { %1822 = dma.hbm_to_vmem [thread:$0]  (!%p2411_p1), %s2409_s8, 16, %s2418_s9, %s406_s10  }
  0x8c   : > { %p2803_p8 = scmp.ne.s32.totalorder %s2790_s22, 0 }
  0x8d   : > { %p2804_p2 = scmp.ne.s32.totalorder (!%p2803_p8), %s2785_s18, 0 }
  0x8e   : > { %424 = sbr.rel (%p2803_p8) target bundleno = 1706 (0x6aa), region = 68 }
  0x95   : > { %2118 = dma.done.wait (%p2804_p2), [#allocation7], 64  }
  0x96   : > { %2120 = vsyncadd (%p2804_p2), [#allocation7], 4294967232  ;;  %s2452_s23 = sand.u32 1, %s2141_s26   ;;  %p2805_p5 = scmp.ne.s32.totalorder %s2787_s20, 0 }
  0x97   : > { %s431_s25 = scalar_lea.sflag [#allocation5], %s2452_s23  ;;  %s433_s3 = scalar_lea.vmem [#allocation8], %s2452_s23 }
  0x98   : > { %2122 = dma.done.wait (%p2805_p5), %s431_s25, 16  }
  0x99   : > { %2124 = vsyncadd (%p2805_p5), %s431_s25, 4294967280 }
  0x9a   : > { %2126 = dma.done.wait (%p2804_p2), [#allocation10], 6144  }
  0x9b   : > { %2128 = vsyncadd (%p2804_p2), [#allocation10], 4294961152 }
  0x9c   : > { %446 = sfence }
  0x9d   : > { %s1407_s22 = sshll.u32 %s2452_s23, 4  ;;  %p483_p1 = scmp.eq.s32.totalorder %s2149_s28, 0 }
  0x9e   : > { %s2466_s8 = scalar_lea.vmem [#allocation12], %s1407_s22  ;;  %p1408_p9 = scmp.ne.s32.totalorder %s2149_s28, 0 }
  0x9f   : > { %s1443_s20 = sshll.u32 (!%p1408_p9), %s2153_s29, 8  ;;  %s497_s9 = sshll.u32 (!%p1408_p9), %s2466_s8, 4  ;;  %v2173_v0 = vmov (!%p1408_p9), 0.0   ;;  %s498_s9 = int_to_ptr.vmem [resolvable:$true] %s497_s9 }
  0xa0   : > { %486 = sbr.rel (%p1408_p9) target bundleno = 190 (0xbe), region = 88  ;;  %s2806_s1 = sld [smem:[#allocation26_spill]] (!%p1408_p9)  ;;  %501 = vst [vmem:[#allocation2] sm:$0xff] (!%p1408_p9), %v2173_v0  ;;  %502 = vst [vmem:[#allocation2 + $0x18] sm:$0xff] (!%p1408_p9), %v2173_v0 }
  0xa6   : > { %s489_s19 = scalar_lea.hbm (!%p1408_p9), %s2806_s1, %s1443_s20  ;;  %s2035_s13 = scalar_lea.hbm (!%p1408_p9), %s2806_s1, 512 }
  0xa7   : > { %s2033_s18 = scalar_lea.hbm %s489_s19, 256  ;;  %p2036_p13 = scmp.lt.u32.totalorder %s489_s19, %s2806_s1 }
  0xa8   : > { %p2034_p11 = scmp.ne.s32.totalorder %s489_s19, %s2033_s18  ;;  %p2037_p10 = scmp.lt.u32.totalorder %s2035_s13, %s2033_s18 }
  0xa9   : > { %p2039_p6 = scmp.lt.u32.totalorder %s2033_s18, %s489_s19 }
  0xaa   : > { %p2038_p4 = por %p2037_p10, %p2036_p13 }
  0xac   : > { %p2040_p12 = por %p2039_p6, %p2038_p4 }
  0xae   : > { %p2041_p0 = pnand %p2040_p12, %p2034_p11 }
  0xb0   : > { %2044 = shalt.err (!%p2041_p0)  }
  0xb1   : > { %s2045_s22 = scalar_lea.vmem %s498_s9, 256  ;;  %s2174_s20 = smov [#allocation12]  }
  0xb2   : > { %p2046_p3 = scmp.ne.s32.totalorder %s498_s9, %s2045_s22  ;;  %s2047_s10 = sshll.u32 %s2174_s20, 4  ;;  %s2048_s10 = int_to_ptr.vmem [resolvable:$false] %s2047_s10 }
  0xb3   : > { %s2049_s21 = scalar_lea.vmem %s2048_s10, 512  ;;  %p2050_p8 = scmp.lt.s32.totalorder %s498_s9, %s2048_s10 }
  0xb4   : > { %p2051_p2 = scmp.lt.s32.totalorder %s2049_s21, %s2045_s22 }
  0xb6   : > { %p2052_p5 = por %p2051_p2, %p2050_p8 }
  0xb8   : > { %p2053_p9 = pnand %p2052_p5, %p2046_p3 }
  0xba   : > { %2056 = shalt.err (!%p2053_p9)  }
  0xbb   : > { %500 = dma.hbm_to_vmem [thread:$0]  %s489_s19, 256, %s498_s9, [#allocation3] }
  0xbc   : > { %2129 = dma.done.wait [#allocation3], 256 }
  0xbd   : > { %2130 = vsyncadd [#allocation3], 4294967040 }
  0xbe PF: > { %s1444_s18 = sshll.u32 %s2149_s28, 6  ;;  %v2175_v1 = vmov 0.0   ;;  %vm2176_vm0 = vmmov 0   ;;  %v2177_v3 = vmov 1.0|1.0   ;;  %v2517_v11 = vld [vmem:[%s2466_s8] sm:$0xff]  ;;  %v636_v14 = vlaneseq }
  0xbf   : > { %1537 = vmatprep.subr.bf16.mxu0 %v2175_v1  ;;  %1553 = vmatprep.mubr.msk.bf16.mxu0 %vm2176_vm0, %v2175_v1  ;;  %s2484_s12 = scalar_lea.vmem [#allocation9], %s1444_s18  ;;  %s2497_s9 = scalar_lea.vmem [#allocation11], %s1444_s18  ;;  %v2520_v12 = vld [vmem:[%s2466_s8 + $0x8] sm:$0xff]  ;;  %v632_v16 = vld [vmem:[%s433_s3] sm:$0x1]  ;;  %vm725_vm3 = vcmask 7168  }
  0xc0   : > { %v1912_v2 = vld [vmem:[%s2484_s12] sm:$0xff]   ;;  %1717 = vmatprep.subr.bf16.mxu1 %v2177_v3  ;;  %v1913_v4 = vld [vmem:[%s2484_s12 + $0x8] sm:$0xff]   ;;  %v1914_v5 = vld [vmem:[%s2484_s12 + $0x10] sm:$0xff]   ;;  %v513_v13 = vpack.c.bf16 %v2520_v12, %v2517_v11  ;;  %s630_s19 = scalar_select %p483_p1, 1, 0  ;;  %v2547_v15 = vshrl.u32 %v636_v14, 7 }
  0xc1   : > { %1718 = vmatpush3.bf16.msra.mxu1 %v2177_v3  ;;  %1538 = vmatpush3.bf16.msra.mxu0 %v1912_v2  ;;  %v1915_v6 = vld [vmem:[%s2484_s12 + $0x18] sm:$0xff]   ;;  %v1916_v7 = vld [vmem:[%s2484_s12 + $0x20] sm:$0xff]   ;;  %v1917_v8 = vld [vmem:[%s2484_s12 + $0x28] sm:$0xff]   ;;  %s2771_s13 = sshll.u32 %s2149_s28, 7  ;;  %s2807_s4 = sld [smem:[#allocation29_spill]] }
  0xc2   : > { %1719 = vmatprep.subr.bf16.mxu1 %v2177_v3  ;;  %1539 = vmatprep.subr.bf16.mxu0 %v2175_v1  ;;  %v1918_v9 = vld [vmem:[%s2484_s12 + $0x30] sm:$0xff]   ;;  %v1919_v10 = vld [vmem:[%s2484_s12 + $0x38] sm:$0xff]   ;;  %s631_s0 = scvt.s32.f32 %s630_s19  ;;  %s510_s11 = sld [smem:[#allocation4 + %s2771_s13]]  ;;  %v2559_v19 = vsub.s32 0, %v2547_v15 }
  0xc3   : > { %s2808_s5 = sld [smem:[#allocation30_spill]] }
  0xc4   : > { %v633_v17 = vstv %s631_s0  ;;  %s2178_s0 = smov 0.0  }
  0xc5   : > { %1720 = vmatpush3.bf16.msra.mxu1 %v2177_v3  ;;  %1540 = vmatpush3.bf16.msra.mxu0 %v1913_v4  ;;  %v634_v18 = vmul.f32 %v633_v17, %v632_v16 }
  0xc6   : > { %1721 = vmatprep.subr.bf16.mxu1 %v2177_v3  ;;  %1541 = vmatprep.subr.bf16.mxu0 %v2175_v1 }
  0xc7   : > { %s533_s20 = scalar_lea.vmem %s2807_s4, %s2149_s28  ;;  %v639_v21 = vrot.slane %v634_v18, %v2559_v19 }
  0xc8   : > { %v1414_v20 = vld [vmem:[%s533_s20] ss:$0 sm:$0xff]  ;;  %v645_v26 = vstv %s510_s11 }
  0xc9   : > { %1722 = vmatpush3.bf16.msra.mxu1 %v2177_v3  ;;  %1542 = vmatpush3.bf16.msra.mxu0 %v1914_v5  ;;  %s836_s13 = scalar_lea.vmem %s2808_s5, %s2149_s28 }
  0xca   : > { %1723 = vmatprep.subr.bf16.mxu1 %v2177_v3  ;;  %1543 = vmatprep.subr.bf16.mxu0 %v2175_v1  ;;  %v837_v63 = vld [vmem:[%s836_s13] sm:$0x1] }
  0xcd   : > { %1724 = vmatpush3.bf16.msra.mxu1 %v2177_v3  ;;  %1544 = vmatpush3.bf16.msra.mxu0 %v1915_v6 }
  0xce   : > { %1725 = vmatprep.subr.bf16.mxu1 %v2177_v3  ;;  %1545 = vmatprep.subr.bf16.mxu0 %v2175_v1 }
  0xd1   : > { %1726 = vmatpush3.bf16.msra.mxu1 %v2177_v3  ;;  %1546 = vmatpush3.bf16.msra.mxu0 %v1916_v7 }
  0xd2   : > { %1727 = vmatprep.subr.bf16.mxu1 %v2177_v3  ;;  %1547 = vmatprep.subr.bf16.mxu0 %v2175_v1 }
  0xd5   : > { %1728 = vmatpush3.bf16.msra.mxu1 %v2177_v3  ;;  %1548 = vmatpush3.bf16.msra.mxu0 %v1917_v8 }
  0xd6   : > { %1729 = vmatprep.subr.bf16.mxu1 %v2177_v3  ;;  %1549 = vmatprep.subr.bf16.mxu0 %v2175_v1 }
  0xd9   : > { %1730 = vmatpush3.bf16.msra.mxu1 %v2177_v3  ;;  %1550 = vmatpush3.bf16.msra.mxu0 %v1918_v9 }
  0xda   : > { %1731 = vmatprep.subr.bf16.mxu1 %v2177_v3  ;;  %1551 = vmatprep.subr.bf16.mxu0 %v2175_v1 }
  0xdd   : > { %1732 = vmatpush3.bf16.msra.mxu1 %v2177_v3  ;;  %1552 = vmatpush3.bf16.msra.mxu0 %v1919_v10 }
  0xde   : > { %1749 = vmatprep.subr.bf16.mxu1 %v2177_v3  ;;  %1733 = vmatprep.subr.bf16.mxu0 %v2177_v3 }
  0xe0   : > { %1554 = vmatmul.mubr.bf16.vlgmr.msra.gmra.mrb[0].mxu0 %v513_v13  ;;  %v868_v13 = vsub.s32 1, %v2547_v15 }
  0xe1   : > { %1734 = vmatpush3.bf16.msra.mxu0 %v2177_v3 }
  0xe2   : > { %1735 = vmatprep.subr.bf16.mxu0 %v2177_v3 }
  0xe5   : > { %1736 = vmatpush3.bf16.msra.mxu0 %v2177_v3 }
  0xe6   : > { %1737 = vmatprep.subr.bf16.mxu0 %v2177_v3 }
  0xe9   : > { %1738 = vmatpush3.bf16.msra.mxu0 %v2177_v3 }
  0xea   : > { %1739 = vmatprep.subr.bf16.mxu0 %v2177_v3 }
  0xed   : > { %1740 = vmatpush3.bf16.msra.mxu0 %v2177_v3 }
  0xee   : > { %1741 = vmatprep.subr.bf16.mxu0 %v2177_v3 }
  0xf1   : > { %1742 = vmatpush3.bf16.msra.mxu0 %v2177_v3 }
  0xf2   : > { %1743 = vmatprep.subr.bf16.mxu0 %v2177_v3 }
  0xf5   : > { %1744 = vmatpush3.bf16.msra.mxu0 %v2177_v3 }
  0xf6   : > { %1745 = vmatprep.subr.bf16.mxu0 %v2177_v3 }
  0xf9   : > { %1746 = vmatpush3.bf16.msra.mxu0 %v2177_v3 }
  0xfa   : > { %1747 = vmatprep.subr.bf16.mxu0 %v2177_v3 }
  0xfd   : > { %1748 = vmatpush3.bf16.msra.mxu0 %v2177_v3 }
  0xfe   : > { %1765 = vmatprep.subr.bf16.mxu0 %v2177_v3 }
 0x1b3   : > { %v623_v22 = vpop.f32.mrb[0].mxu0 }
 0x1b4   : > { %v624_v23 = vadd.f32 %v1414_v20, %v623_v22  ;;  %v1555_v24 = vpop.f32.mrb[1].mxu0 }
 0x1b5   : > { %v626_v25 = vpop.f32.mrb[2].mxu0 }
 0x1b6   : > { %v641_v27 = vadd.f32 %v639_v21, %v624_v23  ;;  %v627_v28 = vadd.f32 %v1414_v20, %v626_v25  ;;  %v1556_v29 = vpop.f32.mrb[3].mxu0  ;;  %v900_v20 = vsub.s32 2, %v2547_v15 }
 0x1b8   : > { %v642_v30 = vadd.f32 %v639_v21, %v627_v28  ;;  %vm643_vm1 = vcmp.ge.f32.partialorder %v641_v27, 0.0  ;;  %v646_v31 = vmul.f32 %v645_v26, %v641_v27 }
 0x1ba   : > { %v2562_v32 = vsel %vm643_vm1, %v641_v27, %v646_v31  ;;  %vm644_vm2 = vcmp.ge.f32.partialorder %v642_v30, 0.0  ;;  %v647_v33 = vmul.f32 %v645_v26, %v642_v30 }
 0x1bb   : > { %1589 = vmatprep.mubr.f32.mxu1 %v2562_v32  ;;  %v738_v34 = vmul.f32 %v2562_v32, %v2562_v32 }
 0x1bc   : > { %v2567_v35 = vsel %vm644_vm2, %v642_v30, %v647_v33 }
 0x1bd   : > { %1590 = vmatmul.mubr.f32.vlgmr.msra.gmra.mrb[0].mxu1 %v2567_v35  ;;  %v739_v36 = vmul.f32 %v2567_v35, %v2567_v35  ;;  %1624 = vmatprep.mubr.f32.mxu0 %v738_v34 }
 0x1be   : > { %1750 = vmatpush3.bf16.msra.mxu1 %v2177_v3 }
 0x1bf   : > { %1625 = vmatmul.mubr.f32.vlgmr.msra.gmra.mrb[4].mxu0 %v739_v36  ;;  %1751 = vmatprep.subr.bf16.mxu1 %v2177_v3 }
 0x1c0   : > { %1766 = vmatpush3.bf16.msra.mxu0 %v2177_v3 }
 0x1c1   : > { %1767 = vmatprep.subr.bf16.mxu0 %v2177_v3 }
 0x1c2   : > { %1752 = vmatpush3.bf16.msra.mxu1 %v2177_v3 }
 0x1c3   : > { %1753 = vmatprep.subr.bf16.mxu1 %v2177_v3 }
 0x1c4   : > { %1768 = vmatpush3.bf16.msra.mxu0 %v2177_v3 }
 0x1c5   : > { %1769 = vmatprep.subr.bf16.mxu0 %v2177_v3 }
 0x1c6   : > { %1754 = vmatpush3.bf16.msra.mxu1 %v2177_v3 }
 0x1c7   : > { %1755 = vmatprep.subr.bf16.mxu1 %v2177_v3 }
 0x1c8   : > { %1770 = vmatpush3.bf16.msra.mxu0 %v2177_v3 }
 0x1c9   : > { %1771 = vmatprep.subr.bf16.mxu0 %v2177_v3 }
 0x1ca   : > { %1756 = vmatpush3.bf16.msra.mxu1 %v2177_v3 }
 0x1cb   : > { %1757 = vmatprep.subr.bf16.mxu1 %v2177_v3 }
 0x1cc   : > { %1772 = vmatpush3.bf16.msra.mxu0 %v2177_v3 }
 0x1cd   : > { %1773 = vmatprep.subr.bf16.mxu0 %v2177_v3 }
 0x1ce   : > { %1758 = vmatpush3.bf16.msra.mxu1 %v2177_v3 }
 0x1cf   : > { %1759 = vmatprep.subr.bf16.mxu1 %v2177_v3 }
 0x1d0   : > { %1774 = vmatpush3.bf16.msra.mxu0 %v2177_v3 }
 0x1d1   : > { %1775 = vmatprep.subr.bf16.mxu0 %v2177_v3 }
 0x1d2   : > { %1760 = vmatpush3.bf16.msra.mxu1 %v2177_v3 }
 0x1d3   : > { %1761 = vmatprep.subr.bf16.mxu1 %v2177_v3 }
 0x1d4   : > { %1776 = vmatpush3.bf16.msra.mxu0 %v2177_v3 }
 0x1d5   : > { %1777 = vmatprep.subr.bf16.mxu0 %v2177_v3 }
 0x1d6   : > { %1762 = vmatpush3.bf16.msra.mxu1 %v2177_v3 }
 0x1d7   : > { %1763 = vmatprep.subr.bf16.mxu1 %v2177_v3 }
 0x1d8   : > { %1778 = vmatpush3.bf16.msra.mxu0 %v2177_v3 }
 0x1d9   : > { %1779 = vmatprep.subr.bf16.mxu0 %v2177_v3 }
 0x1da   : > { %1764 = vmatpush3.bf16.msra.mxu1 %v2177_v3 }
 0x1db   : > { %1697 = vmatprep.subr.bf16.mxu1 %v2175_v1 }
 0x1dc   : > { %1780 = vmatpush3.bf16.msra.mxu0 %v2177_v3 }
 0x290   : > { %v1591_v37 = vpop.f32.mrb[0].mxu1 }
 0x291   : > { %v727_v38 = vsel %vm725_vm3, %v1591_v37, 0.0  ;;  %v716_v39 = vpop.f32.mrb[1].mxu1 }
 0x292   : > { %v726_v40 = vsel %vm725_vm3, %v716_v39, 0.0  ;;  %v1626_v41 = vpop.f32.mrb[4].mxu0 }
 0x293   : > { %v816_v42 = vsel %vm725_vm3, %v1626_v41, 0.0  ;;  %v806_v43 = vpop.f32.mrb[5].mxu0  ;;  %v728_v44 = vadd.f32 %v727_v38, %v726_v40 }
 0x294   : > { %v815_v45 = vsel %vm725_vm3, %v806_v43, 0.0 }
 0x295   : > { %729 = vadd.xlane.f32.xlu0 %v728_v44  ;;  %v817_v46 = vadd.f32 %v816_v42, %v815_v45 }
 0x299   : > { %818 = vadd.xlane.f32.xlu0 %v817_v46 }
 0x322   : > { %v730_v47 = vpop.xlane.xlu0 %729 }
 0x323   : > { %v731_v48 = vrot.slane %v730_v47, 4 }
 0x325   : > { %v732_v49 = vadd.f32 %v731_v48, %v730_v47 }
 0x326   : > { %v819_v50 = vpop.xlane.xlu0 %818 }
 0x327   : > { %v733_v51 = vrot.slane %v732_v49, 2  ;;  %v820_v52 = vrot.slane %v819_v50, 4 }
 0x329   : > { %v821_v53 = vadd.f32 %v820_v52, %v819_v50  ;;  %v734_v54 = vadd.f32 %v733_v51, %v732_v49 }
 0x32b   : > { %v822_v55 = vrot.slane %v821_v53, 2  ;;  %v735_v56 = vrot.slane %v734_v54, 1 }
 0x32d   : > { %v823_v57 = vadd.f32 %v822_v55, %v821_v53  ;;  %v736_v58 = vadd.f32 %v735_v56, %v734_v54  ;;  %v1920_v56 = vld [vmem:[%s2497_s9] sm:$0xff]  }
 0x32f   : > { %1781 = vpush %v736_v58  ;;  %v824_v59 = vrot.slane %v823_v57, 1  ;;  %v1922_v58 = vld [vmem:[%s2497_s9 + $0x10] sm:$0xff]  }
 0x331   : > { %v825_v60 = vadd.f32 %v824_v59, %v823_v57  ;;  %v1921_v57 = vld [vmem:[%s2497_s9 + $0x8] sm:$0xff]   ;;  %v1923_v59 = vld [vmem:[%s2497_s9 + $0x18] sm:$0xff]  }
 0x333   : > { %1783 = vpush %v825_v60  ;;  %v1924_v60 = vld [vmem:[%s2497_s9 + $0x20] sm:$0xff]  }
 0x360   : > { %s1782_s3 = spop %1781 }
 0x361   : > { %s827_s10 = smul.f32 0.00390625, %s1782_s3  ;;  %s2810_s3 = sld [smem:[#allocation31_spill]] }
 0x363   : > { %s829_s21 = smul.f32 %s827_s10, %s827_s10  ;;  %v842_v3 = vstv %s827_s10  ;;  %s2809_s10 = sshll.u32 %s2149_s28, 7 }
 0x364   : > { %s1784_s18 = spop %1783 }
 0x365   : > { %s828_s12 = smul.f32 0.00390625, %s1784_s18  ;;  %s840_s18 = scalar_lea.vmem %s2753_s6, %s2149_s28 }
 0x366   : > { %v841_v4 = vld [vmem:[%s840_s18] sm:$0x1] }
 0x367   : > { %s830_s19 = ssub.f32 %s828_s12, %s829_s21  ;;  %s1423_s21 = sshll.u32 %s2149_s28, 2 }
 0x368   : > { %s862_s13 = scalar_lea.vmem %s2754_s7, %s1423_s21  ;;  %s872_s18 = scalar_lea.vmem %s2810_s3, %s2149_s28 }
 0x369   : > { %s831_s11 = smax.f32 %s2178_s0, %s830_s19  ;;  %v863_v14 = vld [vmem:[%s862_s13] sm:$0x7]  ;;  %s2180_s3 = smov [#allocation12]  }
 0x36a   : > { %s832_s25 = sadd.f32 1e-06, %s831_s11  ;;  %v869_v18 = vrot.slane %v863_v14, %v868_v13  ;;  %s511_s11 = sadd.s32 1, %s2809_s10  ;;  %v889_v23 = vrot.slane %v863_v14, %v2559_v19  ;;  %v1424_v24 = vld [vmem:[%s872_s18] ss:$0 sm:$0xff]  ;;  %v901_v25 = vrot.slane %v863_v14, %v900_v20  ;;  %v1926_v14 = vld [vmem:[%s2497_s9 + $0x30] sm:$0xff]  }
 0x36b   : > { %s512_s21 = sld [smem:[#allocation4 + %s511_s11]]  ;;  %s2061_s18 = sshll.u32 %s2180_s3, 4  ;;  %s2062_s18 = int_to_ptr.vmem [resolvable:$false] %s2061_s18 }
 0x36c   : > { %v833_v61 = vstv %s832_s25 }
 0x36d   : > { %1928 = vrsqrt.f32 %v833_v61 }
 0x371   : > { %v908_v37 = vstv %s512_s21  ;;  %s2811_s21 = sld [smem:[#allocation32_spill]] }
 0x377   : > { %v1929_v62 = vpop.eup %1928 }
 0x378   : > { %1785 = vpush %v1929_v62 }
 0x3a9   : > { %s1786_s1 = spop %1785 }
 0x3aa   : > { %v838_v0 = vstv %s1786_s1  ;;  %s2179_s1 = smov 1  }
 0x3ab   : > { %v839_v2 = vmul.f32 %v838_v0, %v837_v63  ;;  %s508_s2 = sshll.u32 %s2179_s1, %s2149_s28 }
 0x3ac   : > { %s882_s25 = ssub.s32 8, %s508_s2  ;;  %s1318_s19 = scalar_lea.vmem [#allocation2], %s508_s2 }
 0x3ad   : > { %v843_v5 = vmul.f32 %v842_v3, %v839_v2  ;;  %v849_v6 = vrot.slane %v839_v2, %v2559_v19  ;;  %s883_s12 = scalar_lea.vmem [#allocation2], %s882_s25 }
 0x3af   : > { %v844_v7 = vsub.f32 %v841_v4, %v843_v5  ;;  %v851_v8 = vmul.f32 %v849_v6, %v2562_v32  ;;  %v852_v9 = vmul.f32 %v849_v6, %v2567_v35 }
 0x3b1   : > { %v857_v10 = vrot.slane %v844_v7, %v2559_v19 }
 0x3b3   : > { %v859_v16 = vadd.f32 %v857_v10, %v851_v8  ;;  %v860_v17 = vadd.f32 %v857_v10, %v852_v9  ;;  %v1925_v8 = vld [vmem:[%s2497_s9 + $0x28] sm:$0xff]  }
 0x3b5   : > { %864 = vst [vmem:[#allocation2 + $0x8] sm:$0xff] %v859_v16  ;;  %865 = vst [vmem:[#allocation2 + $0x10] sm:$0xff] %v860_v17  ;;  %v870_v21 = vmul.f32 %v869_v18, %v859_v16  ;;  %v871_v22 = vmul.f32 %v869_v18, %v860_v17  ;;  %v1927_v17 = vld [vmem:[%s2497_s9 + $0x38] sm:$0xff]  }
 0x3b7   : > { %v880_v29 = vadd.f32 %v1424_v24, %v870_v21  ;;  %v881_v31 = vadd.f32 %v1424_v24, %v871_v22 }
 0x3bc   : > { %v884_v26 = vld [vmem:[%s883_s12] sm:$0xff]  ;;  %v1425_v27 = vld [vmem:[%s1318_s19 + $0x8] sm:$0xff]  ;;  %v1426_v33 = vld [vmem:[%s1318_s19 + $0x10] sm:$0xff] }
 0x3bd   : > { %v885_v28 = vld [vmem:[%s883_s12 + $0x8] sm:$0xff]  ;;  %v890_v30 = vmul.f32 %v889_v23, %v884_v26  ;;  %v902_v35 = vmul.f32 %v1425_v27, %v901_v25  ;;  %v903_v36 = vmul.f32 %v1426_v33, %v901_v25  ;;  %s1098_s12 = scalar_lea.vmem %s2811_s21, %s2149_s28  ;;  %s2063_s21 = scalar_lea.vmem %s2062_s18, 512 }
 0x3be   : > { %v891_v32 = vmul.f32 %v889_v23, %v885_v28 }
 0x3bf   : > { %v892_v34 = vadd.f32 %v890_v30, %v880_v29 }
 0x3c0   : > { %v893_v15 = vadd.f32 %v891_v32, %v881_v31 }
 0x3c1   : > { %v904_v38 = vadd.f32 %v902_v35, %v892_v34 }
 0x3c2   : > { %v905_v39 = vadd.f32 %v903_v36, %v893_v15 }
 0x3c3   : > { %vm906_vm4 = vcmp.ge.f32.partialorder %v904_v38, 0.0  ;;  %v909_v40 = vmul.f32 %v908_v37, %v904_v38 }
 0x3c4   : > { %vm907_vm5 = vcmp.ge.f32.partialorder %v905_v39, 0.0  ;;  %v910_v41 = vmul.f32 %v908_v37, %v905_v39 }
 0x3c5   : > { %v2634_v42 = vsel %vm906_vm4, %v904_v38, %v909_v40 }
 0x3c6   : > { %v2636_v43 = vsel %vm907_vm5, %v905_v39, %v910_v41  ;;  %1659 = vmatprep.mubr.f32.mxu1 %v2634_v42  ;;  %v1000_v45 = vmul.f32 %v2634_v42, %v2634_v42 }
 0x3c7   : > { %v1001_v44 = vmul.f32 %v2636_v43, %v2636_v43  ;;  %1660 = vmatmul.mubr.f32.vlgmr.msra.gmra.mrb[2].mxu1 %v2636_v43 }
 0x3c8   : > { %1694 = vmatprep.mubr.f32.mxu0 %v1000_v45  ;;  %1713 = vmatprep.mubr.msk.bf16.mxu1 %vm2176_vm0, %v2175_v1 }
 0x3c9   : > { %1695 = vmatmul.mubr.f32.vlgmr.msra.gmra.mrb[6].mxu0 %v1001_v44  ;;  %1698 = vmatpush3.bf16.msra.mxu1 %v1920_v56 }
 0x3ca   : > { %1699 = vmatprep.subr.bf16.mxu1 %v2175_v1 }
 0x3cd   : > { %1700 = vmatpush3.bf16.msra.mxu1 %v1921_v57 }
 0x3ce   : > { %1701 = vmatprep.subr.bf16.mxu1 %v2175_v1 }
 0x3d1   : > { %1702 = vmatpush3.bf16.msra.mxu1 %v1922_v58 }
 0x3d2   : > { %1703 = vmatprep.subr.bf16.mxu1 %v2175_v1 }
 0x3d5   : > { %1704 = vmatpush3.bf16.msra.mxu1 %v1923_v59 }
 0x3d6   : > { %1705 = vmatprep.subr.bf16.mxu1 %v2175_v1 }
 0x3d9   : > { %1706 = vmatpush3.bf16.msra.mxu1 %v1924_v60 }
 0x3da   : > { %1707 = vmatprep.subr.bf16.mxu1 %v2175_v1 }
 0x3dd   : > { %1708 = vmatpush3.bf16.msra.mxu1 %v1925_v8 }
 0x3de   : > { %1709 = vmatprep.subr.bf16.mxu1 %v2175_v1 }
 0x3e1   : > { %1710 = vmatpush3.bf16.msra.mxu1 %v1926_v14 }
 0x3e2   : > { %1711 = vmatprep.subr.bf16.mxu1 %v2175_v1  ;;  %v1099_v1 = vld [vmem:[%s1098_s12] sm:$0x1] }
 0x3e5   : > { %1712 = vmatpush3.bf16.msra.mxu1 %v1927_v17 }
 0x49a   : > { %v1661_v46 = vpop.f32.mrb[2].mxu1 }
 0x49b   : > { %v989_v47 = vsel %vm725_vm3, %v1661_v46, 0.0  ;;  %v979_v48 = vpop.f32.mrb[3].mxu1 }
 0x49c   : > { %v988_v49 = vsel %vm725_vm3, %v979_v48, 0.0  ;;  %v1696_v50 = vpop.f32.mrb[6].mxu0 }
 0x49d   : > { %v1078_v51 = vsel %vm725_vm3, %v1696_v50, 0.0  ;;  %v1068_v52 = vpop.f32.mrb[7].mxu0  ;;  %v990_v53 = vadd.f32 %v989_v47, %v988_v49 }
 0x49e   : > { %v1077_v54 = vsel %vm725_vm3, %v1068_v52, 0.0 }
 0x49f   : > { %991 = vadd.xlane.f32.xlu1 %v990_v53  ;;  %v1079_v55 = vadd.f32 %v1078_v51, %v1077_v54 }
 0x4a3   : > { %1080 = vadd.xlane.f32.xlu1 %v1079_v55 }
 0x52c   : > { %v992_v61 = vpop.xlane.xlu1 %991 }
 0x52d   : > { %v993_v62 = vrot.slane %v992_v61, 4 }
 0x52f   : > { %v994_v63 = vadd.f32 %v993_v62, %v992_v61 }
 0x530   : > { %v1081_v0 = vpop.xlane.xlu1 %1080 }
 0x531   : > { %v995_v2 = vrot.slane %v994_v63, 2  ;;  %v1082_v3 = vrot.slane %v1081_v0, 4 }
 0x533   : > { %v1083_v4 = vadd.f32 %v1082_v3, %v1081_v0  ;;  %v996_v5 = vadd.f32 %v995_v2, %v994_v63 }
 0x535   : > { %v1084_v6 = vrot.slane %v1083_v4, 2  ;;  %v997_v7 = vrot.slane %v996_v5, 1 }
 0x537   : > { %v1085_v9 = vadd.f32 %v1084_v6, %v1083_v4  ;;  %v998_v10 = vadd.f32 %v997_v7, %v996_v5 }
 0x539   : > { %1787 = vpush %v998_v10  ;;  %v1086_v13 = vrot.slane %v1085_v9, 1 }
 0x53b   : > { %v1087_v16 = vadd.f32 %v1086_v13, %v1085_v9 }
 0x53d   : > { %1789 = vpush %v1087_v16 }
 0x56a   : > { %s1788_s13 = spop %1787 }
 0x56b   : > { %s1089_s1 = smul.f32 0.00390625, %s1788_s13  ;;  %s2812_s13 = sld [smem:[#allocation33_spill]] }
 0x56d   : > { %s1091_s2 = smul.f32 %s1089_s1, %s1089_s1  ;;  %v1104_v23 = vstv %s1089_s1 }
 0x56e   : > { %s1790_s10 = spop %1789 }
 0x56f   : > { %s1090_s11 = smul.f32 0.00390625, %s1790_s10  ;;  %s1259_s10 = sshll.u32 %s2466_s8, 4  ;;  %s2691_s10 = int_to_ptr.vmem [resolvable:$true] %s1259_s10 }
 0x570   : > { %p2064_p10 = scmp.lt.s32.totalorder %s2691_s10, %s2062_s18 }
 0x571   : > { %s1092_s25 = ssub.f32 %s1090_s11, %s1091_s2  ;;  %s1102_s5 = scalar_lea.vmem %s2812_s13, %s2149_s28 }
 0x572   : > { %v1103_v24 = vld [vmem:[%s1102_s5] sm:$0x1]  ;;  %s2813_s5 = sld [smem:[#allocation35_spill]]  ;;  %s1446_s2 = sshll.u32 %s2153_s29, 8 }
 0x573   : > { %s1093_s22 = smax.f32 %s2178_s0, %s1092_s25  ;;  %s2057_s29 = scalar_lea.vmem %s2691_s10, 256 }
 0x574   : > { %s1094_s20 = sadd.f32 1e-06, %s1093_s22  ;;  %s2814_s22 = sld [smem:[#allocation36_spill]] }
 0x575   : > { %p2058_p1 = scmp.ne.s32.totalorder %s2691_s10, %s2057_s29  ;;  %p2065_p4 = scmp.lt.s32.totalorder %s2063_s21, %s2057_s29 }
 0x576   : > { %v1095_v18 = vstv %s1094_s20 }
 0x577   : > { %1930 = vrsqrt.f32 %v1095_v18  ;;  %p2059_p11 = pnand %p2058_p1, %p2395_p7  ;;  %p2066_p6 = por %p2065_p4, %p2064_p10 }
 0x578   : > { %s1233_s1 = scalar_lea.vmem %s2813_s5, %s2149_s28  ;;  %s1246_s28 = scalar_lea.sflag [#allocation6], %s2452_s23 }
 0x579   : > { %v1436_v35 = vld [vmem:[%s1233_s1] ss:$0 sm:$0xff]  ;;  %p2060_p13 = pneg %p2059_p11 }
 0x57a   : > { %s2689_s20 = scalar_lea.hbm %s2814_s22, %s1446_s2 }
 0x57b   : > { %p2067_p12 = pnand %p2066_p6, %p2060_p13 }
 0x581   : > { %v1931_v20 = vpop.eup %1930 }
 0x582   : > { %1791 = vpush %v1931_v20 }
 0x5b3   : > { %s1792_s9 = spop %1791 }
 0x5b4   : > { %v1100_v21 = vstv %s1792_s9 }
 0x5b5   : > { %v1101_v22 = vmul.f32 %v1100_v21, %v1099_v1 }
 0x5b7   : > { %v1105_v25 = vmul.f32 %v1104_v23, %v1101_v22  ;;  %v1111_v26 = vrot.slane %v1101_v22, %v2559_v19 }
 0x5b9   : > { %v1106_v27 = vsub.f32 %v1103_v24, %v1105_v25  ;;  %v1113_v28 = vmul.f32 %v1111_v26, %v2634_v42  ;;  %v1114_v29 = vmul.f32 %v1111_v26, %v2636_v43 }
 0x5bb   : > { %v1119_v30 = vrot.slane %v1106_v27, %v2559_v19 }
 0x5bd   : > { %v1121_v31 = vadd.f32 %v1119_v30, %v1113_v28  ;;  %v1122_v32 = vadd.f32 %v1119_v30, %v1114_v29 }
 0x5bf   : > { %v1123_v33 = vpack.c.bf16 %v1122_v32, %v1121_v31 }
 0x5c1   : > { %1714 = vmatmul.mubr.bf16.vlgmr.msra.gmra.mrb[4].mxu1 %v1123_v33 }
 0x694   : > { %v1224_v34 = vpop.f32.mrb[4].mxu1 }
 0x695   : > { %v1231_v15 = vadd.f32 %v1224_v34, %v2517_v11  ;;  %v1715_v36 = vpop.f32.mrb[5].mxu1 }
 0x696   : > { %v1227_v19 = vpop.f32.mrb[6].mxu1 }
 0x697   : > { %v1241_v37 = vadd.f32 %v1436_v35, %v1231_v15  ;;  %v1232_v38 = vadd.f32 %v1227_v19, %v2520_v12  ;;  %v1716_v39 = vpop.f32.mrb[7].mxu1 }
 0x699   : > { %1243 = vst [vmem:[%s2466_s8] sm:$0xff] %v1241_v37  ;;  %v1242_v11 = vadd.f32 %v1436_v35, %v1232_v38 }
 0x69b   : > { %1244 = vst [vmem:[%s2466_s8 + $0x8] sm:$0xff] %v1242_v11 }
 0x69c   : > { %2070 = shalt.err (!%p2067_p12)
}
 0x69d   : > { %s2071_s8 = scalar_lea.hbm %s2689_s20, 256  ;;  %s2075_s19 = scalar_lea.hbm %s2814_s22, 512 }
 0x69e   : > { %p2072_p0 = scmp.ne.s32.totalorder %s2689_s20, %s2071_s8  ;;  %p2076_p2 = scmp.lt.u32.totalorder %s2689_s20, %s2814_s22 }
 0x69f   : > { %p2077_p5 = scmp.lt.u32.totalorder %s2075_s19, %s2071_s8  ;;  %p2079_p1 = scmp.lt.u32.totalorder %s2071_s8, %s2689_s20 }
 0x6a0   : > { %p2073_p3 = pnand %p2072_p0, %p2395_p7 }
 0x6a1   : > { %p2078_p9 = por %p2077_p5, %p2076_p2 }
 0x6a2   : > { %p2074_p8 = pneg %p2073_p3 }
 0x6a3   : > { %p2080_p11 = por %p2079_p1, %p2078_p9 }
 0x6a5   : > { %p2081_p13 = pnand %p2080_p11, %p2074_p8 }
 0x6a7   : > { %2084 = shalt.err (!%p2081_p13)
}
 0x6a8   : > { %s2181_s0 = smov 128   ;;  %s2182_s5 = smov 8  }
 0x6a9   : > { %1807 = dma.vmem_to_hbm [thread:$0]  (%p2395_p7), %s2691_s10, 256, %s2689_s20, %s1246_s28, %s2181_s0, %s2181_s0, %s2182_s5  }
 0x6aa PF: > { %s2815_s1 = sld [smem:[#allocation22_spill]]  ;;  %s2816_s2 = sld [smem:[#allocation23_spill]] }
 0x6ab   : > { %p1834_p10 = scmp.ge.s32.totalorder %s2165_s15, 2 }
 0x6b0   : > { %s1274_s11 = sand.u32 1, %s2815_s1   ;;  %p2817_p4 = scmp.ne.s32.totalorder %s2816_s2, 0 }
 0x6b1   : > { %s1275_s25 = scalar_lea.sflag [#allocation6], %s1274_s11 }
 0x6b2   : > { %p1824_p6 = pnand %p1834_p10, %p2817_p4 }
 0x6b4   : > { %2132 = dma.done.wait (!%p1824_p6), %s1275_s25, 256  }
 0x6b5   : > { %2134 = vsyncadd (!%p1824_p6), %s1275_s25, 4294967040  ;;  %s31_s15 = sadd.s32 1, %s2165_s15   ;;  %s2818_s24 = sld [smem:[#allocation24_spill]] }
 0x6b6   : > { %p28_p12 = scmp.ge.s32.totalorder %s31_s15, 8   ;;  %s2819_s25 = smov %s2141_s26 }
 0x6b7   : > { %s2820_s26 = smov %s2145_s27  ;;  %s2821_s27 = smov %s2416_s17 }
 0x6b8   : > { %s2822_s28 = smov %s2157_s30  ;;  %s2823_s29 = smov %s2161_s14 }
 0x6b9   : > { %s2824_s30 = smov %s2827_s16  ;;  %30 = sbr.rel (!%p28_p12) target bundleno = 22 (0x16), region = 147 }
 0x6bb   : > { %s2825_s14 = smov %s2818_s24 }
 0x6c0   :  { %1280 = vsyncpa [#allocation5], 1 }
 0x6c1   :  { %1282 = vsyncpa [#allocation5 + $0x1], 1 }
 0x6c2   :  { %1283 = vsyncpa [#allocation10], 1 }
 0x6c3   :  { %1284 = vsyncpa [#allocation6], 1 }
 0x6c4   :  { %1286 = vsyncpa [#allocation6 + $0x1], 1 }
 0x6c5   :  { %1287 = vsyncpa [#allocation7], 1 }
 0x6c6   :  { %1289 = vsyncpa [#allocation7 + $0x1], 1 }
 0x6c7   :  { %1290 = vsyncmov [#allocation3] }
 0x6ca   :  { %s1291_s17 = vpop.sfrf %1290 }
 0x6cb   :  { %p1442_p7 = scmp.ne.s32.totalorder %s1291_s17, 0 }
 0x6cd   :  { %1295 = shalt.err (%p1442_p7)  }

</bundles_post_ra>
